<compile_context>
chip_gen: v7x
topology: tpu7x:2x2x1
jax: 0.10.0
libtpu: 0.0.40
codegen_flags: <defaults>
</compile_context>

<pallas_src>
import math
import numpy as np
import jax
import jax.numpy as jnp
from jax.experimental import pallas as pl
from jax.experimental.pallas import tpu as pltpu

SIGMA_H = 0.5  # RNNCell.sigma_h


def _make_kernel(L, TC, BC, H, D_in):
    def kernel(*args):
        x_ref, noise_ref, w_ih0_ref, w_hh0_ref, b0_ref = args[:5]
        layer_refs = args[5:5 + 2 * (L - 1)]
        out_ref, hy_ref = args[5 + 2 * (L - 1): 7 + 2 * (L - 1)]
        scratch = args[7 + 2 * (L - 1):]
        h_scr, pre_scr = scratch[0], scratch[1]
        cat_scr = scratch[2] if L > 1 else None

        c = pl.program_id(1)  # time-chunk index (innermost, sequential)

        # Start of a batch-chunk's time sweep: zero the carried hidden state (hx = zeros).
        @pl.when(c == 0)
        def _():
            h_scr[...] = jnp.zeros_like(h_scr)

        # ---- Off the serial chain: layer-0 input projection for the whole chunk ----
        # pre = x @ W_ih0 + (b_ih0 + b_hh0) + sqrt(sigma_h)*noise0, time-indexed in VMEM scratch.
        # Kept as BC small 2-D matmuls (static loop) to stay on plain 2-D MXU lowerings.
        for b in range(BC):
            pre_b = jnp.dot(x_ref[b], w_ih0_ref[...],
                            preferred_element_type=jnp.float32)           # (TC, H)
            pre_scr[b] = pre_b + b0_ref[...] + noise_ref[0, b]

        # Carried hidden state: one (BC, H) value per layer.
        h = [h_scr[l] for l in range(L)]

        # Static time loop over the chunk (the grid is the rolled outer loop over T).
        for t in range(TC):
            # Layer 0: only the recurrent matmul remains on the serial dependence chain.
            act = (jnp.dot(h[0], w_hh0_ref[...], preferred_element_type=jnp.float32)
                   + pre_scr[:, t, :])
            x_l = jnp.tanh(act)
            h[0] = x_l
            for l in range(1, L):
                w_cat_ref = layer_refs[2 * (l - 1)]
                b_ref = layer_refs[2 * (l - 1) + 1]
                # Fused [x ; h_prev] @ [W_ih ; W_hh]: write the two halves into fixed lane
                # ranges of the persistent staging scratch, then a single MXU dot.
                cat_scr[:, :H] = x_l
                cat_scr[:, H:] = h[l]
                act = (jnp.dot(cat_scr[...], w_cat_ref[...],
                               preferred_element_type=jnp.float32)
                       + b_ref[...] + noise_ref[l, :, t, :])
                x_l = jnp.tanh(act)
                h[l] = x_l
            out_ref[:, t, :] = x_l.astype(out_ref.dtype)   # last-layer hidden at step t

        # Persist state for the next time-chunk; hy's block index is constant along the time
        # axis (VMEM resident), so only the final chunk's value is written back to HBM.
        for l in range(L):
            h_scr[l] = h[l]
            hy_ref[l] = h[l].astype(hy_ref.dtype)

    return kernel


def stochastic_rnn_forward(x, params, noise, *, t_chunk=8, b_chunk=None):
    """x: (B, T, D_in); params: list of (w_ih_t, b_ih, w_hh_t, b_hh) per layer;
    noise: (L, B, T, H) pre-scaled by sqrt(sigma_h). Returns (output (B, T, H), hy (L, B, H))."""
    B, T, D_in = x.shape
    L = len(params)
    H = params[0][0].shape[-1]
    BC = B if b_chunk is None else b_chunk   # on v7x: pass b_chunk = B // 2 (multiple of 8)
    TC = t_chunk
    assert T % TC == 0 and TC % 8 == 0, "t_chunk must divide T and be a multiple of 8"
    assert B % BC == 0, "b_chunk must divide B"

    # Wrapper-side weight prep (free): K-stacked weights for l>=1, pre-summed biases.
    w_ih0_t, b_ih0, w_hh0_t, b_hh0 = params[0]
    b0 = (b_ih0 + b_hh0).reshape(1, H)
    flat_params = [w_ih0_t, w_hh0_t, b0]
    in_specs = [
        pl.BlockSpec((BC, TC, D_in), lambda b, c: (b, c, 0)),       # x chunk, (B, T, D) directly
        pl.BlockSpec((L, BC, TC, H), lambda b, c: (0, b, c, 0)),    # noise chunk
        pl.BlockSpec((D_in, H), lambda b, c: (0, 0)),               # W_ih0^T
        pl.BlockSpec((H, H), lambda b, c: (0, 0)),                  # W_hh0^T
        pl.BlockSpec((1, H), lambda b, c: (0, 0)),                  # b_ih0 + b_hh0
    ]
    for l in range(1, L):
        w_ih_t, b_ih, w_hh_t, b_hh = params[l]
        w_cat = jnp.concatenate([w_ih_t, w_hh_t], axis=0)           # (2H, H), K-stacked
        b_l = (b_ih + b_hh).reshape(1, H)
        flat_params += [w_cat, b_l]
        in_specs += [pl.BlockSpec((2 * H, H), lambda b, c: (0, 0)),
                     pl.BlockSpec((1, H), lambda b, c: (0, 0))]

    out_specs = (
        pl.BlockSpec((BC, TC, H), lambda b, c: (b, c, 0)),          # output written as (B, T, H)
        pl.BlockSpec((L, BC, H), lambda b, c: (0, b, 0)),           # hy, resident over time axis
    )
    out_shapes = (
        jax.ShapeDtypeStruct((B, T, H), x.dtype),
        jax.ShapeDtypeStruct((L, B, H), x.dtype),
    )
    scratch_shapes = [
        pltpu.VMEM((L, BC, H), jnp.float32),    # hidden state carried across time-chunks
        pltpu.VMEM((BC, TC, H), jnp.float32),   # precomputed layer-0 input projection
    ]
    if L > 1:
        scratch_shapes.append(pltpu.VMEM((BC, 2 * H), jnp.float32))  # fused [x ; h] staging

    kernel = _make_kernel(L, TC, BC, H, D_in)
    output, hy = pl.pallas_call(
        kernel,
        out_shape=out_shapes,
        grid_spec=pltpu.PrefetchScalarGridSpec(
            num_scalar_prefetch=0,
            grid=(B // BC, T // TC),            # (batch chunks, time chunks)
            in_specs=in_specs,
            out_specs=out_specs,
            scratch_shapes=scratch_shapes,
        ),
        compiler_params=pltpu.CompilerParams(
            dimension_semantics=("parallel", "arbitrary")),
    )(x, noise, *flat_params)
    return output, hy


def reference_forward(x, params, noise):
    """Pure-JAX replica of StochasticRNN.forward (same pre-scaled noise, shape (L, B, T, H))."""
    B, T, _ = x.shape
    L = len(params)
    H = params[0][0].shape[-1]
    h = [jnp.zeros((B, H), jnp.float32) for _ in range(L)]
    outs = []
    for t in range(T):
        xt = x[:, t, :]
        for l, (w_ih_t, b_ih, w_hh_t, b_hh) in enumerate(params):
            act = xt @ w_ih_t + b_ih + h[l] @ w_hh_t + b_hh + noise[l, :, t, :]
            h[l] = jnp.tanh(act)
            xt = h[l]
        outs.append(h[-1])
    output = jnp.stack(outs, axis=1)
    hy = jnp.stack(h)
    return output, hy


if __name__ == "__main__":
    # Small shapes consistent with the module: batch=2, input_size=4, hidden=32, layers=2.
    # T=16 with t_chunk=8 exercises two time-chunks (state carried across grid iterations).
    B, T, D_in, H, L = 2, 16, 4, 32, 2

    key = jax.random.PRNGKey(0)
    kx, kn, *kp = jax.random.split(key, 2 + 4 * L)
    x = jax.random.normal(kx, (B, T, D_in), jnp.float32)
    # TODO(synk): PyTorch draws torch.normal inside forward(); here the noise is pre-drawn in JAX
    # (same N(0, sigma_h) distribution, std folded into generation) and passed to the kernel.
    noise = math.sqrt(SIGMA_H) * jax.random.normal(kn, (L, B, T, H), jnp.float32)

    # Deterministic parameter init matching nn.RNNCell: U(-1/sqrt(H), 1/sqrt(H)).
    bound = 1.0 / math.sqrt(H)
    params = []
    for l in range(L):
        d_l = D_in if l == 0 else H
        ks = kp[4 * l: 4 * l + 4]
        w_ih_t = jax.random.uniform(ks[0], (d_l, H), jnp.float32, -bound, bound)  # W_ih.T
        b_ih = jax.random.uniform(ks[1], (1, H), jnp.float32, -bound, bound)
        w_hh_t = jax.random.uniform(ks[2], (H, H), jnp.float32, -bound, bound)    # W_hh.T
        b_hh = jax.random.uniform(ks[3], (1, H), jnp.float32, -bound, bound)
        params.append((w_ih_t, b_ih, w_hh_t, b_hh))

    output, hy = stochastic_rnn_forward(x, params, noise, t_chunk=8)
    jax.block_until_ready((output, hy))

    ref_out, ref_hy = reference_forward(x, params, noise)
    np.testing.assert_allclose(np.asarray(output), np.asarray(ref_out), rtol=1e-5, atol=1e-5)
    np.testing.assert_allclose(np.asarray(hy), np.asarray(ref_hy), rtol=1e-5, atol=1e-5)

    print("KERNEL_OK")
</pallas_src>

<mosaic_0001>
module attributes {stable_mosaic.version = 11 : i64} {
  func.func @kernel(%arg0: i32, %arg1: i32, %arg2: memref<2x8x4xf32, #tpu.memory_space<vmem>>, %arg3: memref<2x2x8x32xf32, #tpu.memory_space<vmem>>, %arg4: memref<4x32xf32, #tpu.memory_space<vmem>>, %arg5: memref<32x32xf32, #tpu.memory_space<vmem>>, %arg6: memref<1x32xf32, #tpu.memory_space<vmem>>, %arg7: memref<64x32xf32, #tpu.memory_space<vmem>>, %arg8: memref<1x32xf32, #tpu.memory_space<vmem>>, %arg9: memref<2x8x32xf32, #tpu.memory_space<vmem>>, %arg10: memref<2x2x32xf32, #tpu.memory_space<vmem>>, %arg11: memref<2x2x32xf32, #tpu.memory_space<vmem>>, %arg12: memref<2x8x32xf32, #tpu.memory_space<vmem>>, %arg13: memref<2x64xf32, #tpu.memory_space<vmem>>) attributes {dimension_semantics = [#tpu.dimension_semantics<parallel>, #tpu.dimension_semantics<arbitrary>], iteration_bounds = array<i64: 1, 2>, scalar_prefetch = 0 : i64, scratch_operands = 3 : i64, tpu.core_type = #tpu.core_type<tc>, window_params = [{transform_indices = @transform_0, window_bounds = array<i64: 2, 8, 4>}, {transform_indices = @transform_1, window_bounds = array<i64: 2, 2, 8, 32>}, {pipeline_mode = #tpu.pipeline_mode<synchronous>, transform_indices = @transform_2, window_bounds = array<i64: 4, 32>}, {pipeline_mode = #tpu.pipeline_mode<synchronous>, transform_indices = @transform_3, window_bounds = array<i64: 32, 32>}, {pipeline_mode = #tpu.pipeline_mode<synchronous>, transform_indices = @transform_4, window_bounds = array<i64: 1, 32>}, {pipeline_mode = #tpu.pipeline_mode<synchronous>, transform_indices = @transform_5, window_bounds = array<i64: 64, 32>}, {pipeline_mode = #tpu.pipeline_mode<synchronous>, transform_indices = @transform_6, window_bounds = array<i64: 1, 32>}, {transform_indices = @transform_7, window_bounds = array<i64: 2, 8, 32>}, {transform_indices = @transform_8, window_bounds = array<i64: 2, 2, 32>}]} {
    %c0_i32 = arith.constant 0 : i32
    %0 = arith.cmpi eq, %arg1, %c0_i32 : i32
    %1 = arith.extui %0 : i1 to i32
    %c0_i32_0 = arith.constant 0 : i32
    %2 = arith.cmpi ne, %1, %c0_i32_0 : i32
    scf.if %2 {
      %cst_231 = arith.constant 0.000000e+00 : f32
      %213 = vector.broadcast %cst_231 : f32 to vector<2x2x32xf32>
      %c0_232 = arith.constant 0 : index
      %c0_233 = arith.constant 0 : index
      %c0_234 = arith.constant 0 : index
      %214 = vector.load %arg11[%c0_232, %c0_233, %c0_234] : memref<2x2x32xf32, #tpu.memory_space<vmem>>, vector<2x2x32xf32>
      tpu.vector_store %arg11[%c0_232, %c0_233, %c0_234], %213 {strides = array<i32>} : memref<2x2x32xf32, #tpu.memory_space<vmem>>, vector<2x2x32xf32>,
    } else {
    }
    %c0 = arith.constant 0 : index
    %c0_1 = arith.constant 0 : index
    %c0_2 = arith.constant 0 : index
    %3 = vector.load %arg2[%c0, %c0_1, %c0_2] : memref<2x8x4xf32, #tpu.memory_space<vmem>>, vector<1x8x4xf32>
    %4 = vector.shape_cast %3 : vector<1x8x4xf32> to vector<8x4xf32>
    %c0_3 = arith.constant 0 : index
    %c0_4 = arith.constant 0 : index
    %5 = vector.load %arg4[%c0_3, %c0_4] : memref<4x32xf32, #tpu.memory_space<vmem>>, vector<4x32xf32>
    %cst = arith.constant dense<0.000000e+00> : vector<8x32xf32>
    %6 = tpu.matmul %4, %5, %cst {dimension_numbers = #tpu.dot_dimension_numbers<[1], [0], [0], [1], [0, 0, 1, 1], [], []>} : vector<8x4xf32>, vector<4x32xf32>, vector<8x32xf32> -> vector<8x32xf32>
    %c0_5 = arith.constant 0 : index
    %c0_6 = arith.constant 0 : index
    %7 = vector.load %arg6[%c0_5, %c0_6] : memref<1x32xf32, #tpu.memory_space<vmem>>, vector<1x32xf32>
    %8 = vector.broadcast %7 : vector<1x32xf32> to vector<8x32xf32>
    %9 = arith.addf %6, %8 : vector<8x32xf32>
    %c0_7 = arith.constant 0 : index
    %c0_8 = arith.constant 0 : index
    %c0_9 = arith.constant 0 : index
    %c0_10 = arith.constant 0 : index
    %10 = vector.load %arg3[%c0_7, %c0_8, %c0_9, %c0_10] : memref<2x2x8x32xf32, #tpu.memory_space<vmem>>, vector<1x1x8x32xf32>
    %11 = vector.shape_cast %10 : vector<1x1x8x32xf32> to vector<8x32xf32>
    %12 = arith.addf %9, %11 : vector<8x32xf32>
    %c0_11 = arith.constant 0 : index
    %c0_12 = arith.constant 0 : index
    %c0_13 = arith.constant 0 : index
    %13 = vector.load %arg12[%c0_11, %c0_12, %c0_13] : memref<2x8x32xf32, #tpu.memory_space<vmem>>, vector<1x8x32xf32>
    %14 = vector.shape_cast %13 : vector<1x8x32xf32> to vector<8x32xf32>
    %15 = vector.shape_cast %12 : vector<8x32xf32> to vector<1x8x32xf32>
    tpu.vector_store %arg12[%c0_11, %c0_12, %c0_13], %15 {strides = array<i32>} : memref<2x8x32xf32, #tpu.memory_space<vmem>>, vector<1x8x32xf32>,
    %c1 = arith.constant 1 : index
    %c0_14 = arith.constant 0 : index
    %c0_15 = arith.constant 0 : index
    %16 = vector.load %arg2[%c1, %c0_14, %c0_15] : memref<2x8x4xf32, #tpu.memory_space<vmem>>, vector<1x8x4xf32>
    %17 = vector.shape_cast %16 : vector<1x8x4xf32> to vector<8x4xf32>
    %c0_16 = arith.constant 0 : index
    %c0_17 = arith.constant 0 : index
    %18 = vector.load %arg4[%c0_16, %c0_17] : memref<4x32xf32, #tpu.memory_space<vmem>>, vector<4x32xf32>
    %cst_18 = arith.constant dense<0.000000e+00> : vector<8x32xf32>
    %19 = tpu.matmul %17, %18, %cst_18 {dimension_numbers = #tpu.dot_dimension_numbers<[1], [0], [0], [1], [0, 0, 1, 1], [], []>} : vector<8x4xf32>, vector<4x32xf32>, vector<8x32xf32> -> vector<8x32xf32>
    %c0_19 = arith.constant 0 : index
    %c0_20 = arith.constant 0 : index
    %20 = vector.load %arg6[%c0_19, %c0_20] : memref<1x32xf32, #tpu.memory_space<vmem>>, vector<1x32xf32>
    %21 = vector.broadcast %20 : vector<1x32xf32> to vector<8x32xf32>
    %22 = arith.addf %19, %21 : vector<8x32xf32>
    %c0_21 = arith.constant 0 : index
    %c1_22 = arith.constant 1 : index
    %c0_23 = arith.constant 0 : index
    %c0_24 = arith.constant 0 : index
    %23 = vector.load %arg3[%c0_21, %c1_22, %c0_23, %c0_24] : memref<2x2x8x32xf32, #tpu.memory_space<vmem>>, vector<1x1x8x32xf32>
    %24 = vector.shape_cast %23 : vector<1x1x8x32xf32> to vector<8x32xf32>
    %25 = arith.addf %22, %24 : vector<8x32xf32>
    %c1_25 = arith.constant 1 : index
    %c0_26 = arith.constant 0 : index
    %c0_27 = arith.constant 0 : index
    %26 = vector.load %arg12[%c1_25, %c0_26, %c0_27] : memref<2x8x32xf32, #tpu.memory_space<vmem>>, vector<1x8x32xf32>
    %27 = vector.shape_cast %26 : vector<1x8x32xf32> to vector<8x32xf32>
    %28 = vector.shape_cast %25 : vector<8x32xf32> to vector<1x8x32xf32>
    tpu.vector_store %arg12[%c1_25, %c0_26, %c0_27], %28 {strides = array<i32>} : memref<2x8x32xf32, #tpu.memory_space<vmem>>, vector<1x8x32xf32>,
    %c0_28 = arith.constant 0 : index
    %c0_29 = arith.constant 0 : index
    %c0_30 = arith.constant 0 : index
    %29 = vector.load %arg11[%c0_28, %c0_29, %c0_30] : memref<2x2x32xf32, #tpu.memory_space<vmem>>, vector<1x2x32xf32>
    %30 = vector.shape_cast %29 : vector<1x2x32xf32> to vector<2x32xf32>
    %c1_31 = arith.constant 1 : index
    %c0_32 = arith.constant 0 : index
    %c0_33 = arith.constant 0 : index
    %31 = vector.load %arg11[%c1_31, %c0_32, %c0_33] : memref<2x2x32xf32, #tpu.memory_space<vmem>>, vector<1x2x32xf32>
    %32 = vector.shape_cast %31 : vector<1x2x32xf32> to vector<2x32xf32>
    %c0_34 = arith.constant 0 : index
    %c0_35 = arith.constant 0 : index
    %33 = vector.load %arg5[%c0_34, %c0_35] : memref<32x32xf32, #tpu.memory_space<vmem>>, vector<32x32xf32>
    %cst_36 = arith.constant dense<0.000000e+00> : vector<2x32xf32>
    %34 = tpu.matmul %30, %33, %cst_36 {dimension_numbers = #tpu.dot_dimension_numbers<[1], [0], [0], [1], [0, 0, 1, 1], [], []>} : vector<2x32xf32>, vector<32x32xf32>, vector<2x32xf32> -> vector<2x32xf32>
    %c0_37 = arith.constant 0 : index
    %c0_38 = arith.constant 0 : index
    %c0_39 = arith.constant 0 : index
    %35 = vector.load %arg12[%c0_37, %c0_38, %c0_39] : memref<2x8x32xf32, #tpu.memory_space<vmem>>, vector<2x1x32xf32>
    %36 = vector.shape_cast %35 : vector<2x1x32xf32> to vector<2x32xf32>
    %37 = arith.addf %34, %36 : vector<2x32xf32>
    %38 = math.tanh %37 : vector<2x32xf32>
    %c0_40 = arith.constant 0 : index
    %c0_41 = arith.constant 0 : index
    %39 = vector.load %arg13[%c0_40, %c0_41] : memref<2x64xf32, #tpu.memory_space<vmem>>, vector<2x32xf32>
    tpu.vector_store %arg13[%c0_40, %c0_41], %38 {strides = array<i32>} : memref<2x64xf32, #tpu.memory_space<vmem>>, vector<2x32xf32>,
    %c0_42 = arith.constant 0 : index
    %c32 = arith.constant 32 : index
    %40 = vector.load %arg13[%c0_42, %c32] : memref<2x64xf32, #tpu.memory_space<vmem>>, vector<2x32xf32>
    tpu.vector_store %arg13[%c0_42, %c32], %32 {strides = array<i32>} : memref<2x64xf32, #tpu.memory_space<vmem>>, vector<2x32xf32>,
    %c0_43 = arith.constant 0 : index
    %c0_44 = arith.constant 0 : index
    %41 = vector.load %arg13[%c0_43, %c0_44] : memref<2x64xf32, #tpu.memory_space<vmem>>, vector<2x64xf32>
    %c0_45 = arith.constant 0 : index
    %c0_46 = arith.constant 0 : index
    %42 = vector.load %arg7[%c0_45, %c0_46] : memref<64x32xf32, #tpu.memory_space<vmem>>, vector<64x32xf32>
    %cst_47 = arith.constant dense<0.000000e+00> : vector<2x32xf32>
    %43 = tpu.matmul %41, %42, %cst_47 {dimension_numbers = #tpu.dot_dimension_numbers<[1], [0], [0], [1], [0, 0, 1, 1], [], []>} : vector<2x64xf32>, vector<64x32xf32>, vector<2x32xf32> -> vector<2x32xf32>
    %c0_48 = arith.constant 0 : index
    %c0_49 = arith.constant 0 : index
    %44 = vector.load %arg8[%c0_48, %c0_49] : memref<1x32xf32, #tpu.memory_space<vmem>>, vector<1x32xf32>
    %45 = vector.broadcast %44 : vector<1x32xf32> to vector<2x32xf32>
    %46 = arith.addf %43, %45 : vector<2x32xf32>
    %c1_50 = arith.constant 1 : index
    %c0_51 = arith.constant 0 : index
    %c0_52 = arith.constant 0 : index
    %c0_53 = arith.constant 0 : index
    %47 = vector.load %arg3[%c1_50, %c0_51, %c0_52, %c0_53] : memref<2x2x8x32xf32, #tpu.memory_space<vmem>>, vector<1x2x1x32xf32>
    %48 = vector.shape_cast %47 : vector<1x2x1x32xf32> to vector<2x32xf32>
    %49 = arith.addf %46, %48 : vector<2x32xf32>
    %50 = math.tanh %49 : vector<2x32xf32>
    %c0_54 = arith.constant 0 : index
    %c0_55 = arith.constant 0 : index
    %c0_56 = arith.constant 0 : index
    %51 = vector.load %arg9[%c0_54, %c0_55, %c0_56] : memref<2x8x32xf32, #tpu.memory_space<vmem>>, vector<2x1x32xf32>
    %52 = vector.shape_cast %51 : vector<2x1x32xf32> to vector<2x32xf32>
    %53 = vector.shape_cast %50 : vector<2x32xf32> to vector<2x1x32xf32>
    tpu.vector_store %arg9[%c0_54, %c0_55, %c0_56], %53 {strides = array<i32>} : memref<2x8x32xf32, #tpu.memory_space<vmem>>, vector<2x1x32xf32>,
    %c0_57 = arith.constant 0 : index
    %c0_58 = arith.constant 0 : index
    %54 = vector.load %arg5[%c0_57, %c0_58] : memref<32x32xf32, #tpu.memory_space<vmem>>, vector<32x32xf32>
    %cst_59 = arith.constant dense<0.000000e+00> : vector<2x32xf32>
    %55 = tpu.matmul %38, %54, %cst_59 {dimension_numbers = #tpu.dot_dimension_numbers<[1], [0], [0], [1], [0, 0, 1, 1], [], []>} : vector<2x32xf32>, vector<32x32xf32>, vector<2x32xf32> -> vector<2x32xf32>
    %c0_60 = arith.constant 0 : index
    %c1_61 = arith.constant 1 : index
    %c0_62 = arith.constant 0 : index
    %56 = vector.load %arg12[%c0_60, %c1_61, %c0_62] : memref<2x8x32xf32, #tpu.memory_space<vmem>>, vector<2x1x32xf32>
    %57 = vector.shape_cast %56 : vector<2x1x32xf32> to vector<2x32xf32>
    %58 = arith.addf %55, %57 : vector<2x32xf32>
    %59 = math.tanh %58 : vector<2x32xf32>
    %c0_63 = arith.constant 0 : index
    %c0_64 = arith.constant 0 : index
    %60 = vector.load %arg13[%c0_63, %c0_64] : memref<2x64xf32, #tpu.memory_space<vmem>>, vector<2x32xf32>
    tpu.vector_store %arg13[%c0_63, %c0_64], %59 {strides = array<i32>} : memref<2x64xf32, #tpu.memory_space<vmem>>, vector<2x32xf32>,
    %c0_65 = arith.constant 0 : index
    %c32_66 = arith.constant 32 : index
    %61 = vector.load %arg13[%c0_65, %c32_66] : memref<2x64xf32, #tpu.memory_space<vmem>>, vector<2x32xf32>
    tpu.vector_store %arg13[%c0_65, %c32_66], %50 {strides = array<i32>} : memref<2x64xf32, #tpu.memory_space<vmem>>, vector<2x32xf32>,
    %c0_67 = arith.constant 0 : index
    %c0_68 = arith.constant 0 : index
    %62 = vector.load %arg13[%c0_67, %c0_68] : memref<2x64xf32, #tpu.memory_space<vmem>>, vector<2x64xf32>
    %c0_69 = arith.constant 0 : index
    %c0_70 = arith.constant 0 : index
    %63 = vector.load %arg7[%c0_69, %c0_70] : memref<64x32xf32, #tpu.memory_space<vmem>>, vector<64x32xf32>
    %cst_71 = arith.constant dense<0.000000e+00> : vector<2x32xf32>
    %64 = tpu.matmul %62, %63, %cst_71 {dimension_numbers = #tpu.dot_dimension_numbers<[1], [0], [0], [1], [0, 0, 1, 1], [], []>} : vector<2x64xf32>, vector<64x32xf32>, vector<2x32xf32> -> vector<2x32xf32>
    %c0_72 = arith.constant 0 : index
    %c0_73 = arith.constant 0 : index
    %65 = vector.load %arg8[%c0_72, %c0_73] : memref<1x32xf32, #tpu.memory_space<vmem>>, vector<1x32xf32>
    %66 = vector.broadcast %65 : vector<1x32xf32> to vector<2x32xf32>
    %67 = arith.addf %64, %66 : vector<2x32xf32>
    %c1_74 = arith.constant 1 : index
    %c0_75 = arith.constant 0 : index
    %c1_76 = arith.constant 1 : index
    %c0_77 = arith.constant 0 : index
    %68 = vector.load %arg3[%c1_74, %c0_75, %c1_76, %c0_77] : memref<2x2x8x32xf32, #tpu.memory_space<vmem>>, vector<1x2x1x32xf32>
    %69 = vector.shape_cast %68 : vector<1x2x1x32xf32> to vector<2x32xf32>
    %70 = arith.addf %67, %69 : vector<2x32xf32>
    %71 = math.tanh %70 : vector<2x32xf32>
    %c0_78 = arith.constant 0 : index
    %c1_79 = arith.constant 1 : index
    %c0_80 = arith.constant 0 : index
    %72 = vector.load %arg9[%c0_78, %c1_79, %c0_80] : memref<2x8x32xf32, #tpu.memory_space<vmem>>, vector<2x1x32xf32>
    %73 = vector.shape_cast %72 : vector<2x1x32xf32> to vector<2x32xf32>
    %74 = vector.shape_cast %71 : vector<2x32xf32> to vector<2x1x32xf32>
    tpu.vector_store %arg9[%c0_78, %c1_79, %c0_80], %74 {strides = array<i32>} : memref<2x8x32xf32, #tpu.memory_space<vmem>>, vector<2x1x32xf32>,
    %c0_81 = arith.constant 0 : index
    %c0_82 = arith.constant 0 : index
    %75 = vector.load %arg5[%c0_81, %c0_82] : memref<32x32xf32, #tpu.memory_space<vmem>>, vector<32x32xf32>
    %cst_83 = arith.constant dense<0.000000e+00> : vector<2x32xf32>
    %76 = tpu.matmul %59, %75, %cst_83 {dimension_numbers = #tpu.dot_dimension_numbers<[1], [0], [0], [1], [0, 0, 1, 1], [], []>} : vector<2x32xf32>, vector<32x32xf32>, vector<2x32xf32> -> vector<2x32xf32>
    %c0_84 = arith.constant 0 : index
    %c2 = arith.constant 2 : index
    %c0_85 = arith.constant 0 : index
    %77 = vector.load %arg12[%c0_84, %c2, %c0_85] : memref<2x8x32xf32, #tpu.memory_space<vmem>>, vector<2x1x32xf32>
    %78 = vector.shape_cast %77 : vector<2x1x32xf32> to vector<2x32xf32>
    %79 = arith.addf %76, %78 : vector<2x32xf32>
    %80 = math.tanh %79 : vector<2x32xf32>
    %c0_86 = arith.constant 0 : index
    %c0_87 = arith.constant 0 : index
    %81 = vector.load %arg13[%c0_86, %c0_87] : memref<2x64xf32, #tpu.memory_space<vmem>>, vector<2x32xf32>
    tpu.vector_store %arg13[%c0_86, %c0_87], %80 {strides = array<i32>} : memref<2x64xf32, #tpu.memory_space<vmem>>, vector<2x32xf32>,
    %c0_88 = arith.constant 0 : index
    %c32_89 = arith.constant 32 : index
    %82 = vector.load %arg13[%c0_88, %c32_89] : memref<2x64xf32, #tpu.memory_space<vmem>>, vector<2x32xf32>
    tpu.vector_store %arg13[%c0_88, %c32_89], %71 {strides = array<i32>} : memref<2x64xf32, #tpu.memory_space<vmem>>, vector<2x32xf32>,
    %c0_90 = arith.constant 0 : index
    %c0_91 = arith.constant 0 : index
    %83 = vector.load %arg13[%c0_90, %c0_91] : memref<2x64xf32, #tpu.memory_space<vmem>>, vector<2x64xf32>
    %c0_92 = arith.constant 0 : index
    %c0_93 = arith.constant 0 : index
    %84 = vector.load %arg7[%c0_92, %c0_93] : memref<64x32xf32, #tpu.memory_space<vmem>>, vector<64x32xf32>
    %cst_94 = arith.constant dense<0.000000e+00> : vector<2x32xf32>
    %85 = tpu.matmul %83, %84, %cst_94 {dimension_numbers = #tpu.dot_dimension_numbers<[1], [0], [0], [1], [0, 0, 1, 1], [], []>} : vector<2x64xf32>, vector<64x32xf32>, vector<2x32xf32> -> vector<2x32xf32>
    %c0_95 = arith.constant 0 : index
    %c0_96 = arith.constant 0 : index
    %86 = vector.load %arg8[%c0_95, %c0_96] : memref<1x32xf32, #tpu.memory_space<vmem>>, vector<1x32xf32>
    %87 = vector.broadcast %86 : vector<1x32xf32> to vector<2x32xf32>
    %88 = arith.addf %85, %87 : vector<2x32xf32>
    %c1_97 = arith.constant 1 : index
    %c0_98 = arith.constant 0 : index
    %c2_99 = arith.constant 2 : index
    %c0_100 = arith.constant 0 : index
    %89 = vector.load %arg3[%c1_97, %c0_98, %c2_99, %c0_100] : memref<2x2x8x32xf32, #tpu.memory_space<vmem>>, vector<1x2x1x32xf32>
    %90 = vector.shape_cast %89 : vector<1x2x1x32xf32> to vector<2x32xf32>
    %91 = arith.addf %88, %90 : vector<2x32xf32>
    %92 = math.tanh %91 : vector<2x32xf32>
    %c0_101 = arith.constant 0 : index
    %c2_102 = arith.constant 2 : index
    %c0_103 = arith.constant 0 : index
    %93 = vector.load %arg9[%c0_101, %c2_102, %c0_103] : memref<2x8x32xf32, #tpu.memory_space<vmem>>, vector<2x1x32xf32>
    %94 = vector.shape_cast %93 : vector<2x1x32xf32> to vector<2x32xf32>
    %95 = vector.shape_cast %92 : vector<2x32xf32> to vector<2x1x32xf32>
    tpu.vector_store %arg9[%c0_101, %c2_102, %c0_103], %95 {strides = array<i32>} : memref<2x8x32xf32, #tpu.memory_space<vmem>>, vector<2x1x32xf32>,
    %c0_104 = arith.constant 0 : index
    %c0_105 = arith.constant 0 : index
    %96 = vector.load %arg5[%c0_104, %c0_105] : memref<32x32xf32, #tpu.memory_space<vmem>>, vector<32x32xf32>
    %cst_106 = arith.constant dense<0.000000e+00> : vector<2x32xf32>
    %97 = tpu.matmul %80, %96, %cst_106 {dimension_numbers = #tpu.dot_dimension_numbers<[1], [0], [0], [1], [0, 0, 1, 1], [], []>} : vector<2x32xf32>, vector<32x32xf32>, vector<2x32xf32> -> vector<2x32xf32>
    %c0_107 = arith.constant 0 : index
    %c3 = arith.constant 3 : index
    %c0_108 = arith.constant 0 : index
    %98 = vector.load %arg12[%c0_107, %c3, %c0_108] : memref<2x8x32xf32, #tpu.memory_space<vmem>>, vector<2x1x32xf32>
    %99 = vector.shape_cast %98 : vector<2x1x32xf32> to vector<2x32xf32>
    %100 = arith.addf %97, %99 : vector<2x32xf32>
    %101 = math.tanh %100 : vector<2x32xf32>
    %c0_109 = arith.constant 0 : index
    %c0_110 = arith.constant 0 : index
    %102 = vector.load %arg13[%c0_109, %c0_110] : memref<2x64xf32, #tpu.memory_space<vmem>>, vector<2x32xf32>
    tpu.vector_store %arg13[%c0_109, %c0_110], %101 {strides = array<i32>} : memref<2x64xf32, #tpu.memory_space<vmem>>, vector<2x32xf32>,
    %c0_111 = arith.constant 0 : index
    %c32_112 = arith.constant 32 : index
    %103 = vector.load %arg13[%c0_111, %c32_112] : memref<2x64xf32, #tpu.memory_space<vmem>>, vector<2x32xf32>
    tpu.vector_store %arg13[%c0_111, %c32_112], %92 {strides = array<i32>} : memref<2x64xf32, #tpu.memory_space<vmem>>, vector<2x32xf32>,
    %c0_113 = arith.constant 0 : index
    %c0_114 = arith.constant 0 : index
    %104 = vector.load %arg13[%c0_113, %c0_114] : memref<2x64xf32, #tpu.memory_space<vmem>>, vector<2x64xf32>
    %c0_115 = arith.constant 0 : index
    %c0_116 = arith.constant 0 : index
    %105 = vector.load %arg7[%c0_115, %c0_116] : memref<64x32xf32, #tpu.memory_space<vmem>>, vector<64x32xf32>
    %cst_117 = arith.constant dense<0.000000e+00> : vector<2x32xf32>
    %106 = tpu.matmul %104, %105, %cst_117 {dimension_numbers = #tpu.dot_dimension_numbers<[1], [0], [0], [1], [0, 0, 1, 1], [], []>} : vector<2x64xf32>, vector<64x32xf32>, vector<2x32xf32> -> vector<2x32xf32>
    %c0_118 = arith.constant 0 : index
    %c0_119 = arith.constant 0 : index
    %107 = vector.load %arg8[%c0_118, %c0_119] : memref<1x32xf32, #tpu.memory_space<vmem>>, vector<1x32xf32>
    %108 = vector.broadcast %107 : vector<1x32xf32> to vector<2x32xf32>
    %109 = arith.addf %106, %108 : vector<2x32xf32>
    %c1_120 = arith.constant 1 : index
    %c0_121 = arith.constant 0 : index
    %c3_122 = arith.constant 3 : index
    %c0_123 = arith.constant 0 : index
    %110 = vector.load %arg3[%c1_120, %c0_121, %c3_122, %c0_123] : memref<2x2x8x32xf32, #tpu.memory_space<vmem>>, vector<1x2x1x32xf32>
    %111 = vector.shape_cast %110 : vector<1x2x1x32xf32> to vector<2x32xf32>
    %112 = arith.addf %109, %111 : vector<2x32xf32>
    %113 = math.tanh %112 : vector<2x32xf32>
    %c0_124 = arith.constant 0 : index
    %c3_125 = arith.constant 3 : index
    %c0_126 = arith.constant 0 : index
    %114 = vector.load %arg9[%c0_124, %c3_125, %c0_126] : memref<2x8x32xf32, #tpu.memory_space<vmem>>, vector<2x1x32xf32>
    %115 = vector.shape_cast %114 : vector<2x1x32xf32> to vector<2x32xf32>
    %116 = vector.shape_cast %113 : vector<2x32xf32> to vector<2x1x32xf32>
    tpu.vector_store %arg9[%c0_124, %c3_125, %c0_126], %116 {strides = array<i32>} : memref<2x8x32xf32, #tpu.memory_space<vmem>>, vector<2x1x32xf32>,
    %c0_127 = arith.constant 0 : index
    %c0_128 = arith.constant 0 : index
    %117 = vector.load %arg5[%c0_127, %c0_128] : memref<32x32xf32, #tpu.memory_space<vmem>>, vector<32x32xf32>
    %cst_129 = arith.constant dense<0.000000e+00> : vector<2x32xf32>
    %118 = tpu.matmul %101, %117, %cst_129 {dimension_numbers = #tpu.dot_dimension_numbers<[1], [0], [0], [1], [0, 0, 1, 1], [], []>} : vector<2x32xf32>, vector<32x32xf32>, vector<2x32xf32> -> vector<2x32xf32>
    %c0_130 = arith.constant 0 : index
    %c4 = arith.constant 4 : index
    %c0_131 = arith.constant 0 : index
    %119 = vector.load %arg12[%c0_130, %c4, %c0_131] : memref<2x8x32xf32, #tpu.memory_space<vmem>>, vector<2x1x32xf32>
    %120 = vector.shape_cast %119 : vector<2x1x32xf32> to vector<2x32xf32>
    %121 = arith.addf %118, %120 : vector<2x32xf32>
    %122 = math.tanh %121 : vector<2x32xf32>
    %c0_132 = arith.constant 0 : index
    %c0_133 = arith.constant 0 : index
    %123 = vector.load %arg13[%c0_132, %c0_133] : memref<2x64xf32, #tpu.memory_space<vmem>>, vector<2x32xf32>
    tpu.vector_store %arg13[%c0_132, %c0_133], %122 {strides = array<i32>} : memref<2x64xf32, #tpu.memory_space<vmem>>, vector<2x32xf32>,
    %c0_134 = arith.constant 0 : index
    %c32_135 = arith.constant 32 : index
    %124 = vector.load %arg13[%c0_134, %c32_135] : memref<2x64xf32, #tpu.memory_space<vmem>>, vector<2x32xf32>
    tpu.vector_store %arg13[%c0_134, %c32_135], %113 {strides = array<i32>} : memref<2x64xf32, #tpu.memory_space<vmem>>, vector<2x32xf32>,
    %c0_136 = arith.constant 0 : index
    %c0_137 = arith.constant 0 : index
    %125 = vector.load %arg13[%c0_136, %c0_137] : memref<2x64xf32, #tpu.memory_space<vmem>>, vector<2x64xf32>
    %c0_138 = arith.constant 0 : index
    %c0_139 = arith.constant 0 : index
    %126 = vector.load %arg7[%c0_138, %c0_139] : memref<64x32xf32, #tpu.memory_space<vmem>>, vector<64x32xf32>
    %cst_140 = arith.constant dense<0.000000e+00> : vector<2x32xf32>
    %127 = tpu.matmul %125, %126, %cst_140 {dimension_numbers = #tpu.dot_dimension_numbers<[1], [0], [0], [1], [0, 0, 1, 1], [], []>} : vector<2x64xf32>, vector<64x32xf32>, vector<2x32xf32> -> vector<2x32xf32>
    %c0_141 = arith.constant 0 : index
    %c0_142 = arith.constant 0 : index
    %128 = vector.load %arg8[%c0_141, %c0_142] : memref<1x32xf32, #tpu.memory_space<vmem>>, vector<1x32xf32>
    %129 = vector.broadcast %128 : vector<1x32xf32> to vector<2x32xf32>
    %130 = arith.addf %127, %129 : vector<2x32xf32>
    %c1_143 = arith.constant 1 : index
    %c0_144 = arith.constant 0 : index
    %c4_145 = arith.constant 4 : index
    %c0_146 = arith.constant 0 : index
    %131 = vector.load %arg3[%c1_143, %c0_144, %c4_145, %c0_146] : memref<2x2x8x32xf32, #tpu.memory_space<vmem>>, vector<1x2x1x32xf32>
    %132 = vector.shape_cast %131 : vector<1x2x1x32xf32> to vector<2x32xf32>
    %133 = arith.addf %130, %132 : vector<2x32xf32>
    %134 = math.tanh %133 : vector<2x32xf32>
    %c0_147 = arith.constant 0 : index
    %c4_148 = arith.constant 4 : index
    %c0_149 = arith.constant 0 : index
    %135 = vector.load %arg9[%c0_147, %c4_148, %c0_149] : memref<2x8x32xf32, #tpu.memory_space<vmem>>, vector<2x1x32xf32>
    %136 = vector.shape_cast %135 : vector<2x1x32xf32> to vector<2x32xf32>
    %137 = vector.shape_cast %134 : vector<2x32xf32> to vector<2x1x32xf32>
    tpu.vector_store %arg9[%c0_147, %c4_148, %c0_149], %137 {strides = array<i32>} : memref<2x8x32xf32, #tpu.memory_space<vmem>>, vector<2x1x32xf32>,
    %c0_150 = arith.constant 0 : index
    %c0_151 = arith.constant 0 : index
    %138 = vector.load %arg5[%c0_150, %c0_151] : memref<32x32xf32, #tpu.memory_space<vmem>>, vector<32x32xf32>
    %cst_152 = arith.constant dense<0.000000e+00> : vector<2x32xf32>
    %139 = tpu.matmul %122, %138, %cst_152 {dimension_numbers = #tpu.dot_dimension_numbers<[1], [0], [0], [1], [0, 0, 1, 1], [], []>} : vector<2x32xf32>, vector<32x32xf32>, vector<2x32xf32> -> vector<2x32xf32>
    %c0_153 = arith.constant 0 : index
    %c5 = arith.constant 5 : index
    %c0_154 = arith.constant 0 : index
    %140 = vector.load %arg12[%c0_153, %c5, %c0_154] : memref<2x8x32xf32, #tpu.memory_space<vmem>>, vector<2x1x32xf32>
    %141 = vector.shape_cast %140 : vector<2x1x32xf32> to vector<2x32xf32>
    %142 = arith.addf %139, %141 : vector<2x32xf32>
    %143 = math.tanh %142 : vector<2x32xf32>
    %c0_155 = arith.constant 0 : index
    %c0_156 = arith.constant 0 : index
    %144 = vector.load %arg13[%c0_155, %c0_156] : memref<2x64xf32, #tpu.memory_space<vmem>>, vector<2x32xf32>
    tpu.vector_store %arg13[%c0_155, %c0_156], %143 {strides = array<i32>} : memref<2x64xf32, #tpu.memory_space<vmem>>, vector<2x32xf32>,
    %c0_157 = arith.constant 0 : index
    %c32_158 = arith.constant 32 : index
    %145 = vector.load %arg13[%c0_157, %c32_158] : memref<2x64xf32, #tpu.memory_space<vmem>>, vector<2x32xf32>
    tpu.vector_store %arg13[%c0_157, %c32_158], %134 {strides = array<i32>} : memref<2x64xf32, #tpu.memory_space<vmem>>, vector<2x32xf32>,
    %c0_159 = arith.constant 0 : index
    %c0_160 = arith.constant 0 : index
    %146 = vector.load %arg13[%c0_159, %c0_160] : memref<2x64xf32, #tpu.memory_space<vmem>>, vector<2x64xf32>
    %c0_161 = arith.constant 0 : index
    %c0_162 = arith.constant 0 : index
    %147 = vector.load %arg7[%c0_161, %c0_162] : memref<64x32xf32, #tpu.memory_space<vmem>>, vector<64x32xf32>
    %cst_163 = arith.constant dense<0.000000e+00> : vector<2x32xf32>
    %148 = tpu.matmul %146, %147, %cst_163 {dimension_numbers = #tpu.dot_dimension_numbers<[1], [0], [0], [1], [0, 0, 1, 1], [], []>} : vector<2x64xf32>, vector<64x32xf32>, vector<2x32xf32> -> vector<2x32xf32>
    %c0_164 = arith.constant 0 : index
    %c0_165 = arith.constant 0 : index
    %149 = vector.load %arg8[%c0_164, %c0_165] : memref<1x32xf32, #tpu.memory_space<vmem>>, vector<1x32xf32>
    %150 = vector.broadcast %149 : vector<1x32xf32> to vector<2x32xf32>
    %151 = arith.addf %148, %150 : vector<2x32xf32>
    %c1_166 = arith.constant 1 : index
    %c0_167 = arith.constant 0 : index
    %c5_168 = arith.constant 5 : index
    %c0_169 = arith.constant 0 : index
    %152 = vector.load %arg3[%c1_166, %c0_167, %c5_168, %c0_169] : memref<2x2x8x32xf32, #tpu.memory_space<vmem>>, vector<1x2x1x32xf32>
    %153 = vector.shape_cast %152 : vector<1x2x1x32xf32> to vector<2x32xf32>
    %154 = arith.addf %151, %153 : vector<2x32xf32>
    %155 = math.tanh %154 : vector<2x32xf32>
    %c0_170 = arith.constant 0 : index
    %c5_171 = arith.constant 5 : index
    %c0_172 = arith.constant 0 : index
    %156 = vector.load %arg9[%c0_170, %c5_171, %c0_172] : memref<2x8x32xf32, #tpu.memory_space<vmem>>, vector<2x1x32xf32>
    %157 = vector.shape_cast %156 : vector<2x1x32xf32> to vector<2x32xf32>
    %158 = vector.shape_cast %155 : vector<2x32xf32> to vector<2x1x32xf32>
    tpu.vector_store %arg9[%c0_170, %c5_171, %c0_172], %158 {strides = array<i32>} : memref<2x8x32xf32, #tpu.memory_space<vmem>>, vector<2x1x32xf32>,
    %c0_173 = arith.constant 0 : index
    %c0_174 = arith.constant 0 : index
    %159 = vector.load %arg5[%c0_173, %c0_174] : memref<32x32xf32, #tpu.memory_space<vmem>>, vector<32x32xf32>
    %cst_175 = arith.constant dense<0.000000e+00> : vector<2x32xf32>
    %160 = tpu.matmul %143, %159, %cst_175 {dimension_numbers = #tpu.dot_dimension_numbers<[1], [0], [0], [1], [0, 0, 1, 1], [], []>} : vector<2x32xf32>, vector<32x32xf32>, vector<2x32xf32> -> vector<2x32xf32>
    %c0_176 = arith.constant 0 : index
    %c6 = arith.constant 6 : index
    %c0_177 = arith.constant 0 : index
    %161 = vector.load %arg12[%c0_176, %c6, %c0_177] : memref<2x8x32xf32, #tpu.memory_space<vmem>>, vector<2x1x32xf32>
    %162 = vector.shape_cast %161 : vector<2x1x32xf32> to vector<2x32xf32>
    %163 = arith.addf %160, %162 : vector<2x32xf32>
    %164 = math.tanh %163 : vector<2x32xf32>
    %c0_178 = arith.constant 0 : index
    %c0_179 = arith.constant 0 : index
    %165 = vector.load %arg13[%c0_178, %c0_179] : memref<2x64xf32, #tpu.memory_space<vmem>>, vector<2x32xf32>
    tpu.vector_store %arg13[%c0_178, %c0_179], %164 {strides = array<i32>} : memref<2x64xf32, #tpu.memory_space<vmem>>, vector<2x32xf32>,
    %c0_180 = arith.constant 0 : index
    %c32_181 = arith.constant 32 : index
    %166 = vector.load %arg13[%c0_180, %c32_181] : memref<2x64xf32, #tpu.memory_space<vmem>>, vector<2x32xf32>
    tpu.vector_store %arg13[%c0_180, %c32_181], %155 {strides = array<i32>} : memref<2x64xf32, #tpu.memory_space<vmem>>, vector<2x32xf32>,
    %c0_182 = arith.constant 0 : index
    %c0_183 = arith.constant 0 : index
    %167 = vector.load %arg13[%c0_182, %c0_183] : memref<2x64xf32, #tpu.memory_space<vmem>>, vector<2x64xf32>
    %c0_184 = arith.constant 0 : index
    %c0_185 = arith.constant 0 : index
    %168 = vector.load %arg7[%c0_184, %c0_185] : memref<64x32xf32, #tpu.memory_space<vmem>>, vector<64x32xf32>
    %cst_186 = arith.constant dense<0.000000e+00> : vector<2x32xf32>
    %169 = tpu.matmul %167, %168, %cst_186 {dimension_numbers = #tpu.dot_dimension_numbers<[1], [0], [0], [1], [0, 0, 1, 1], [], []>} : vector<2x64xf32>, vector<64x32xf32>, vector<2x32xf32> -> vector<2x32xf32>
    %c0_187 = arith.constant 0 : index
    %c0_188 = arith.constant 0 : index
    %170 = vector.load %arg8[%c0_187, %c0_188] : memref<1x32xf32, #tpu.memory_space<vmem>>, vector<1x32xf32>
    %171 = vector.broadcast %170 : vector<1x32xf32> to vector<2x32xf32>
    %172 = arith.addf %169, %171 : vector<2x32xf32>
    %c1_189 = arith.constant 1 : index
    %c0_190 = arith.constant 0 : index
    %c6_191 = arith.constant 6 : index
    %c0_192 = arith.constant 0 : index
    %173 = vector.load %arg3[%c1_189, %c0_190, %c6_191, %c0_192] : memref<2x2x8x32xf32, #tpu.memory_space<vmem>>, vector<1x2x1x32xf32>
    %174 = vector.shape_cast %173 : vector<1x2x1x32xf32> to vector<2x32xf32>
    %175 = arith.addf %172, %174 : vector<2x32xf32>
    %176 = math.tanh %175 : vector<2x32xf32>
    %c0_193 = arith.constant 0 : index
    %c6_194 = arith.constant 6 : index
    %c0_195 = arith.constant 0 : index
    %177 = vector.load %arg9[%c0_193, %c6_194, %c0_195] : memref<2x8x32xf32, #tpu.memory_space<vmem>>, vector<2x1x32xf32>
    %178 = vector.shape_cast %177 : vector<2x1x32xf32> to vector<2x32xf32>
    %179 = vector.shape_cast %176 : vector<2x32xf32> to vector<2x1x32xf32>
    tpu.vector_store %arg9[%c0_193, %c6_194, %c0_195], %179 {strides = array<i32>} : memref<2x8x32xf32, #tpu.memory_space<vmem>>, vector<2x1x32xf32>,
    %c0_196 = arith.constant 0 : index
    %c0_197 = arith.constant 0 : index
    %180 = vector.load %arg5[%c0_196, %c0_197] : memref<32x32xf32, #tpu.memory_space<vmem>>, vector<32x32xf32>
    %cst_198 = arith.constant dense<0.000000e+00> : vector<2x32xf32>
    %181 = tpu.matmul %164, %180, %cst_198 {dimension_numbers = #tpu.dot_dimension_numbers<[1], [0], [0], [1], [0, 0, 1, 1], [], []>} : vector<2x32xf32>, vector<32x32xf32>, vector<2x32xf32> -> vector<2x32xf32>
    %c0_199 = arith.constant 0 : index
    %c7 = arith.constant 7 : index
    %c0_200 = arith.constant 0 : index
    %182 = vector.load %arg12[%c0_199, %c7, %c0_200] : memref<2x8x32xf32, #tpu.memory_space<vmem>>, vector<2x1x32xf32>
    %183 = vector.shape_cast %182 : vector<2x1x32xf32> to vector<2x32xf32>
    %184 = arith.addf %181, %183 : vector<2x32xf32>
    %185 = math.tanh %184 : vector<2x32xf32>
    %c0_201 = arith.constant 0 : index
    %c0_202 = arith.constant 0 : index
    %186 = vector.load %arg13[%c0_201, %c0_202] : memref<2x64xf32, #tpu.memory_space<vmem>>, vector<2x32xf32>
    tpu.vector_store %arg13[%c0_201, %c0_202], %185 {strides = array<i32>} : memref<2x64xf32, #tpu.memory_space<vmem>>, vector<2x32xf32>,
    %c0_203 = arith.constant 0 : index
    %c32_204 = arith.constant 32 : index
    %187 = vector.load %arg13[%c0_203, %c32_204] : memref<2x64xf32, #tpu.memory_space<vmem>>, vector<2x32xf32>
    tpu.vector_store %arg13[%c0_203, %c32_204], %176 {strides = array<i32>} : memref<2x64xf32, #tpu.memory_space<vmem>>, vector<2x32xf32>,
    %c0_205 = arith.constant 0 : index
    %c0_206 = arith.constant 0 : index
    %188 = vector.load %arg13[%c0_205, %c0_206] : memref<2x64xf32, #tpu.memory_space<vmem>>, vector<2x64xf32>
    %c0_207 = arith.constant 0 : index
    %c0_208 = arith.constant 0 : index
    %189 = vector.load %arg7[%c0_207, %c0_208] : memref<64x32xf32, #tpu.memory_space<vmem>>, vector<64x32xf32>
    %cst_209 = arith.constant dense<0.000000e+00> : vector<2x32xf32>
    %190 = tpu.matmul %188, %189, %cst_209 {dimension_numbers = #tpu.dot_dimension_numbers<[1], [0], [0], [1], [0, 0, 1, 1], [], []>} : vector<2x64xf32>, vector<64x32xf32>, vector<2x32xf32> -> vector<2x32xf32>
    %c0_210 = arith.constant 0 : index
    %c0_211 = arith.constant 0 : index
    %191 = vector.load %arg8[%c0_210, %c0_211] : memref<1x32xf32, #tpu.memory_space<vmem>>, vector<1x32xf32>
    %192 = vector.broadcast %191 : vector<1x32xf32> to vector<2x32xf32>
    %193 = arith.addf %190, %192 : vector<2x32xf32>
    %c1_212 = arith.constant 1 : index
    %c0_213 = arith.constant 0 : index
    %c7_214 = arith.constant 7 : index
    %c0_215 = arith.constant 0 : index
    %194 = vector.load %arg3[%c1_212, %c0_213, %c7_214, %c0_215] : memref<2x2x8x32xf32, #tpu.memory_space<vmem>>, vector<1x2x1x32xf32>
    %195 = vector.shape_cast %194 : vector<1x2x1x32xf32> to vector<2x32xf32>
    %196 = arith.addf %193, %195 : vector<2x32xf32>
    %197 = math.tanh %196 : vector<2x32xf32>
    %c0_216 = arith.constant 0 : index
    %c7_217 = arith.constant 7 : index
    %c0_218 = arith.constant 0 : index
    %198 = vector.load %arg9[%c0_216, %c7_217, %c0_218] : memref<2x8x32xf32, #tpu.memory_space<vmem>>, vector<2x1x32xf32>
    %199 = vector.shape_cast %198 : vector<2x1x32xf32> to vector<2x32xf32>
    %200 = vector.shape_cast %197 : vector<2x32xf32> to vector<2x1x32xf32>
    tpu.vector_store %arg9[%c0_216, %c7_217, %c0_218], %200 {strides = array<i32>} : memref<2x8x32xf32, #tpu.memory_space<vmem>>, vector<2x1x32xf32>,
    %c0_219 = arith.constant 0 : index
    %c0_220 = arith.constant 0 : index
    %c0_221 = arith.constant 0 : index
    %201 = vector.load %arg11[%c0_219, %c0_220, %c0_221] : memref<2x2x32xf32, #tpu.memory_space<vmem>>, vector<1x2x32xf32>
    %202 = vector.shape_cast %201 : vector<1x2x32xf32> to vector<2x32xf32>
    %203 = vector.shape_cast %185 : vector<2x32xf32> to vector<1x2x32xf32>
    tpu.vector_store %arg11[%c0_219, %c0_220, %c0_221], %203 {strides = array<i32>} : memref<2x2x32xf32, #tpu.memory_space<vmem>>, vector<1x2x32xf32>,
    %c0_222 = arith.constant 0 : index
    %c0_223 = arith.constant 0 : index
    %c0_224 = arith.constant 0 : index
    %204 = vector.load %arg10[%c0_222, %c0_223, %c0_224] : memref<2x2x32xf32, #tpu.memory_space<vmem>>, vector<1x2x32xf32>
    %205 = vector.shape_cast %204 : vector<1x2x32xf32> to vector<2x32xf32>
    %206 = vector.shape_cast %185 : vector<2x32xf32> to vector<1x2x32xf32>
    tpu.vector_store %arg10[%c0_222, %c0_223, %c0_224], %206 {strides = array<i32>} : memref<2x2x32xf32, #tpu.memory_space<vmem>>, vector<1x2x32xf32>,
    %c1_225 = arith.constant 1 : index
    %c0_226 = arith.constant 0 : index
    %c0_227 = arith.constant 0 : index
    %207 = vector.load %arg11[%c1_225, %c0_226, %c0_227] : memref<2x2x32xf32, #tpu.memory_space<vmem>>, vector<1x2x32xf32>
    %208 = vector.shape_cast %207 : vector<1x2x32xf32> to vector<2x32xf32>
    %209 = vector.shape_cast %197 : vector<2x32xf32> to vector<1x2x32xf32>
    tpu.vector_store %arg11[%c1_225, %c0_226, %c0_227], %209 {strides = array<i32>} : memref<2x2x32xf32, #tpu.memory_space<vmem>>, vector<1x2x32xf32>,
    %c1_228 = arith.constant 1 : index
    %c0_229 = arith.constant 0 : index
    %c0_230 = arith.constant 0 : index
    %210 = vector.load %arg10[%c1_228, %c0_229, %c0_230] : memref<2x2x32xf32, #tpu.memory_space<vmem>>, vector<1x2x32xf32>
    %211 = vector.shape_cast %210 : vector<1x2x32xf32> to vector<2x32xf32>
    %212 = vector.shape_cast %197 : vector<2x32xf32> to vector<1x2x32xf32>
    tpu.vector_store %arg10[%c1_228, %c0_229, %c0_230], %212 {strides = array<i32>} : memref<2x2x32xf32, #tpu.memory_space<vmem>>, vector<1x2x32xf32>,
    return
  }
  func.func @transform_0(%arg0: i32, %arg1: i32) -> (i32, i32, i32) {
    %c0_i32 = arith.constant 0 : i32
    %c0_i32_0 = arith.constant 0 : i32
    return %arg0, %arg1, %c0_i32 : i32, i32, i32
  }
  func.func @transform_1(%arg0: i32, %arg1: i32) -> (i32, i32, i32, i32) {
    %c0_i32 = arith.constant 0 : i32
    %c0_i32_0 = arith.constant 0 : i32
    %c0_i32_1 = arith.constant 0 : i32
    return %c0_i32, %arg0, %arg1, %c0_i32_0 : i32, i32, i32, i32
  }
  func.func @transform_2(%arg0: i32, %arg1: i32) -> (i32, i32) {
    %c0_i32 = arith.constant 0 : i32
    %c0_i32_0 = arith.constant 0 : i32
    %c0_i32_1 = arith.constant 0 : i32
    return %c0_i32, %c0_i32_0 : i32, i32
  }
  func.func @transform_3(%arg0: i32, %arg1: i32) -> (i32, i32) {
    %c0_i32 = arith.constant 0 : i32
    %c0_i32_0 = arith.constant 0 : i32
    %c0_i32_1 = arith.constant 0 : i32
    return %c0_i32, %c0_i32_0 : i32, i32
  }
  func.func @transform_4(%arg0: i32, %arg1: i32) -> (i32, i32) {
    %c0_i32 = arith.constant 0 : i32
    %c0_i32_0 = arith.constant 0 : i32
    %c0_i32_1 = arith.constant 0 : i32
    return %c0_i32, %c0_i32_0 : i32, i32
  }
  func.func @transform_5(%arg0: i32, %arg1: i32) -> (i32, i32) {
    %c0_i32 = arith.constant 0 : i32
    %c0_i32_0 = arith.constant 0 : i32
    %c0_i32_1 = arith.constant 0 : i32
    return %c0_i32, %c0_i32_0 : i32, i32
  }
  func.func @transform_6(%arg0: i32, %arg1: i32) -> (i32, i32) {
    %c0_i32 = arith.constant 0 : i32
    %c0_i32_0 = arith.constant 0 : i32
    %c0_i32_1 = arith.constant 0 : i32
    return %c0_i32, %c0_i32_0 : i32, i32
  }
  func.func @transform_7(%arg0: i32, %arg1: i32) -> (i32, i32, i32) {
    %c0_i32 = arith.constant 0 : i32
    %c0_i32_0 = arith.constant 0 : i32
    return %arg0, %arg1, %c0_i32 : i32, i32, i32
  }
  func.func @transform_8(%arg0: i32, %arg1: i32) -> (i32, i32, i32) {
    %c0_i32 = arith.constant 0 : i32
    %c0_i32_0 = arith.constant 0 : i32
    %c0_i32_1 = arith.constant 0 : i32
    return %c0_i32, %arg0, %c0_i32_0 : i32, i32, i32
  }
}

</mosaic_0001>

<bundles_post_ra>
// kernel: tpu_custom_call.1
= control target key start
LH: loop header
LB: loop body
LE: loop exit
PB: predicated region body
PF: predicated region fallthrough
CT: control target
= control target key end

     0   :  { %14 = vsyncpa [#allocation8], 0  ;;  %s3870_s0 = inlined_call_operand.vmem [shape: f32[2,16,4], index: 0, kind: input, shape index: {}]   ;;  %s3871_s1 = inlined_call_operand.vmem [shape: f32[2,2,16,32], index: 1, kind: input, shape index: {}]   ;;  %s3872_s2 = inlined_call_operand.vmem [shape: f32[4,32], index: 2, kind: input, shape index: {}]   ;;  %s3873_s3 = inlined_call_operand.vmem [shape: f32[32,32], index: 3, kind: input, shape index: {}]   ;;  %s3874_s4 = inlined_call_operand.vmem [shape: f32[1,32], index: 4, kind: input, shape index: {}]   ;;  %s3875_s5 = inlined_call_operand.vmem [shape: f32[64,32], index: 5, kind: input, shape index: {}]   ;;  %s3876_s6 = inlined_call_operand.vmem [shape: f32[1,32], index: 6, kind: input, shape index: {}]   ;;  %s3877_s7 = inlined_call_operand.hbm [shape: f32[2,16,32], index: 7, kind: output, shape index: {0}]   ;;  %s3878_s8 = inlined_call_operand.hbm [shape: f32[2,2,32], index: 8, kind: output, shape index: {1}]  }
   0x1   :  { %16 = vsyncpa [#allocation8 + $0x1], 0 }
   0x2   :  { %17 = vsyncpa [#allocation10], 0  ;;  %s3355_s27 = smov 0   ;;  %s3357_s28 = smov 0  }
   0x3   :  { %s3359_s29 = smov 0   ;;  %s3361_s30 = smov 0  }
   0x4   :  { %s3363_s9 = smov 0   ;;  %s3365_s10 = smov 0  }
   0x5 LB: > { %s2507_s11 = sadd.s32 4294967295, %s3296_s10   ;;  %s2508_s12 = sadd.s32 4294967294, %s3296_s10   ;;  %s3296_s10 = sphi %s3365_s10, %s23_s10   ;;  %s3292_s9 = sphi %s3363_s9, %s3892_s9   ;;  %s3288_s30 = sphi %s3361_s30, %s3891_s30   ;;  %s3284_s29 = sphi %s3359_s29, %s3890_s29   ;;  %s3280_s28 = sphi %s3357_s28, %s3889_s28   ;;  %s3276_s27 = sphi %s3355_s27, %s3888_s27  }
   0x6   : > { %s32_s13 = sadd.s32 1, %s3292_s9  ;;  %s44_s14 = sadd.s32 1, %s3284_s29 }
   0x7   : > { %p33_p0 = scmp.ge.s32.totalorder %s32_s13, 2  ;;  %p51_p1 = scmp.ne.s32.totalorder %s3284_s29, %s3280_s28 }
   0x8   : > { %p52_p2 = scmp.eq.s32.totalorder %s3296_s10, 0  ;;  %p3392_p3 = scmp.eq.s32.totalorder %s2507_s11, 1 }
   0x9   : > { %s3894_s13 = smov (%p33_p0, %s32_s13), 0  ;;  %p221_p6 = scmp.ne.s32.totalorder %s3280_s28, %s3276_s27 }
   0xa   : > { %3881 = sst [smem:[#allocation13_spill]] %s3894_s13  ;;  %p3398_p4 = por %p52_p2, %p51_p1 }
   0xb   : > { %p3404_p5 = por %p3392_p3, %p51_p1  ;;  %s40_s18 = ssub.s32 %s3292_s9, %s3894_s13 }
   0xc   : > { %p42_p7 = scmp.eq.s32.totalorder %s40_s18, 0  ;;  %p222_p8 = scmp.eq.s32.totalorder %s2508_s12, 1 }
   0xd   : > { %p2510_p10 = scmp.ge.s32.totalorder %s3296_s10, 2 }
   0xe   : > { %s3413_s19 = scalar_select %p42_p7, %s3284_s29, %s44_s14  }
   0xf   : > { %p3415_p9 = por %p222_p8, %p221_p6  ;;  %279 = sbr.rel (%p2510_p10) target bundleno = 36 (0x24), region = 36 }
  0x10   : > { %3884 = sst [smem:[#allocation14_spill]] %s3413_s19 }
  0x16   : > { %282 = sbr.rel (!%p3398_p4) target bundleno = 29 (0x1d), region = 40  ;;  %s284_s21 = sand.u32 (%p3398_p4), 1, %s3284_s29  }
  0x17   : > { %s2512_s22 = sshll.u32 (%p3398_p4), %s3292_s9, 3  ;;  %s2511_s23 = sshll.u32 (%p3398_p4), %s284_s21, 4 }
  0x18   : > { %s291_s26 = scalar_lea.vmem (%p3398_p4), %s3870_s0, %s2512_s22  ;;  %s286_s11 = scalar_lea.vmem (%p3398_p4), [#allocation5], %s2511_s23 }
  0x19   : > { %v321_v0 = vld [vmem:[%s291_s26] sm:$0xff] (%p3398_p4)  ;;  %v323_v1 = vld [vmem:[%s291_s26 + $0x10] sm:$0xff] (%p3398_p4) }
  0x1a   : > { %322 = vst [vmem:[%s286_s11] sm:$0xff] (%p3398_p4), %v321_v0  ;;  %324 = vst [vmem:[%s286_s11 + $0x8] sm:$0xff] (%p3398_p4), %v323_v1 }
  0x1d PF: > { %330 = sbr.rel (!%p3398_p4) target bundleno = 36 (0x24), region = 78  ;;  %s332_s12 = sand.u32 (%p3398_p4), 1, %s3284_s29  }
  0x1e   : > { %s2514_s14 = sshll.u32 (%p3398_p4), %s3292_s9, 3  ;;  %s2513_s18 = sshll.u32 (%p3398_p4), %s332_s12, 5 }
  0x1f   : > { %s339_s19 = scalar_lea.vmem (%p3398_p4), %s3871_s1, %s2514_s14  ;;  %s334_s22 = scalar_lea.vmem (%p3398_p4), [#allocation6], %s2513_s18 }
  0x20   : > { %v373_v2 = vld [vmem:[%s339_s19] sm:$0xff] (%p3398_p4)  ;;  %v375_v3 = vld [vmem:[%s339_s19 + $0x10] sm:$0xff] (%p3398_p4) }
  0x21   : > { %v377_v4 = vld [vmem:[%s339_s19 + $0x20] sm:$0xff] (%p3398_p4)  ;;  %374 = vst [vmem:[%s334_s22] sm:$0xff] (%p3398_p4), %v373_v2  ;;  %376 = vst [vmem:[%s334_s22 + $0x8] sm:$0xff] (%p3398_p4), %v375_v3  ;;  %v379_v5 = vld [vmem:[%s339_s19 + $0x30] sm:$0xff] (%p3398_p4) }
  0x22   : > { %378 = vst [vmem:[%s334_s22 + $0x10] sm:$0xff] (%p3398_p4), %v377_v4  ;;  %380 = vst [vmem:[%s334_s22 + $0x18] sm:$0xff] (%p3398_p4), %v379_v5 }
  0x24 PF: > { %p2515_p11 = scmp.ge.s32.totalorder %s3296_s10, 1  ;;  %p385_p12 = scmp.lt.s32.totalorder %s3296_s10, 3 }
  0x26   : > { %p386_p13 = pnand %p2515_p11, %p385_p12 }
  0x27   : > { %s3439_s13 = sand.u32 (!%p386_p13), 1, %s3280_s28   ;;  %p2519_p0 = scmp.ne.s32.totalorder (!%p386_p13), %s3288_s30, 0 }
  0x28   : > { %389 = sbr.rel (%p386_p13) target bundleno = 3025 (0xbd1), region = 116  ;;  %s2516_s16 = sshll.u32 (!%p386_p13), %s3439_s13, 4 }
  0x29   : > { %s2517_s23 = sshll.u32 (!%p386_p13), %s3439_s13, 5  ;;  %s394_s24 = scalar_lea.vmem (!%p386_p13), [#allocation5], %s2516_s16 }
  0x2a   : > { %s3443_s25 = scalar_lea.vmem (!%p386_p13), [#allocation6], %s2517_s23  ;;  %s3445_s19 = scalar_lea.vmem (!%p386_p13), [#allocation7], %s2516_s16 }
  0x2f   : > { %442 = sbr.rel (%p2519_p0) target bundleno = 54 (0x36), region = 128  ;;  %vm443_vm0 = vcmask (!%p2519_p0), 254976   ;;  %v3298_v6 = vmov (!%p2519_p0), 0.0  }
  0x30   : > { %444 = vst.msk [vmem:[#allocation2] sm:$0x3] (!%p2519_p0), %vm443_vm0, %v3298_v6  ;;  %445 = vst.msk [vmem:[#allocation2 + $0x2] sm:$0x3] (!%p2519_p0), %vm443_vm0, %v3298_v6 }
  0x36 PF: > { %vm459_vm1 = vcmask 1043456   ;;  %v539_v7 = vld [vmem:[%s3872_s2] sm:$0xf]  ;;  %v3299_v8 = vmov 0.0   ;;  %vm455_vm2 = vcmask 31744   ;;  %v446_v11 = vld [vmem:[%s394_s24] sm:$0xff] }
  0x37   : > { %2695 = vmatprep.subr.mxu1 %v3299_v8  ;;  %2690 = vmatprep.subr.mxu0 %v3299_v8  ;;  %v447_v9 = vld [vmem:[%s3872_s2] sm:$0xf]  ;;  %vm3300_vm3 = vmmov 0   ;;  %v632_v13 = vld [vmem:[%s3873_s3 + $0x8] sm:$0xff]  ;;  %v633_v15 = vld [vmem:[%s3873_s3 + $0x10] sm:$0xff]  ;;  %v3301_v18 = vmov 0.0|0.0  }
  0x38   : > { %v2523_v10 = vld [vmem:[%s394_s24 + $0x8] sm:$0xff]  ;;  %2696 = vmatpush3.msk.msra.mxu1 %vm459_vm1, %v539_v7  ;;  %2697 = vmatprep.mubr.msk.f32.mxu1 %vm3300_vm3, %v3299_v8  ;;  %s3302_s12 = smov 32   ;;  %vm535_vm4 = vcmask 261120   ;;  %v533_v37 = vld [vmem:[%s3443_s25] sm:$0xff]  ;;  %vm640_vm5 = vcmask 1041409   ;;  %vm717_vm6 = vcmask 254976  }
  0x39   : > { %v631_v12 = vld [vmem:[%s3873_s3] sm:$0xff]  ;;  %2691 = vmatpush3.msk.msra.mxu0 %vm459_vm1, %v447_v9  ;;  %2692 = vmatprep.mubr.msk.f32.mxu0 %vm3300_vm3, %v3299_v8  ;;  %v634_v16 = vld [vmem:[%s3873_s3 + $0x18] sm:$0xff]  ;;  %v727_v22 = vld [vmem:[%s3875_s5 + $0x8] sm:$0xff]  ;;  %vm723_vm7 = vcmask 517376   ;;  %vm741_vm8 = vcmask 523264   ;;  %vm850_vm9 = vcmask 253952  }
  0x3a   : > { %v3466_v14 = vpack.c.bf16 %v632_v13, %v631_v12  ;;  %v630_v17 = vld [vmem:[#allocation2 + $0x2] sm:$0x3]  ;;  %2698 = vmatmul.mubr.msk.f32.vlgmr.msra.gmra.mrb[0].mxu1 %vm455_vm2, %v2523_v10  ;;  %2693 = vmatmul.mubr.msk.f32.vlgmr.msra.gmra.mrb[0].mxu0 %vm455_vm2, %v446_v11  ;;  %v3478_v19 = vpack.c.bf16 %v634_v16, %v633_v15  ;;  %v628_v20 = vld [vmem:[#allocation2] sm:$0x3]  ;;  %v728_v23 = vld [vmem:[%s3875_s5 + $0x10] sm:$0xff]  ;;  %v829_v10 = vlaneseq  ;;  %s3304_s21 = smov [#allocation9]  }
  0x3b   : > { %2940 = vmatprep.subr.bf16.mxu1 %v3301_v18  ;;  %2708 = vmatprep.mubr.msk.f32.mxu1 %vm3300_vm3, %v3299_v8  ;;  %v726_v21 = vld [vmem:[%s3875_s5] sm:$0xff]  ;;  %v729_v25 = vld [vmem:[%s3875_s5 + $0x18] sm:$0xff]  ;;  %v731_v28 = vld [vmem:[%s3875_s5 + $0x28] sm:$0xff]  ;;  %v3303_v7 = vmov 1966171168   ;;  %s2394_s22 = sshll.u32 %s3304_s21, 4  ;;  %s2395_s22 = int_to_ptr.vmem [resolvable:$true] %s2394_s22 }
  0x3c   : > { %2942 = vmatpush3.bf16.msra.mxu1 %v3466_v14  ;;  %720 = vrot.lane.b32.xlu0 %v630_v17, %s3302_s12  ;;  %v3503_v24 = vpack.c.bf16 %v727_v22, %v726_v21  ;;  %v3509_v26 = vpack.c.bf16 %v729_v25, %v728_v23  ;;  %v730_v27 = vld [vmem:[%s3875_s5 + $0x20] sm:$0xff]  ;;  %v732_v30 = vld [vmem:[%s3875_s5 + $0x30] sm:$0xff]  ;;  %v733_v31 = vld [vmem:[%s3875_s5 + $0x38] sm:$0xff]  ;;  %v827_v9 = vunpack.c.l.s4 %v3303_v7  ;;  %v830_v12 = vshrl.u32 %v829_v10, 7  ;;  %s2569_s16 = sshll.u32 %s3288_s30, 7  ;;  %s3188_s23 = scalar_lea.vmem %s2395_s22, 64 }
  0x3d   : > { %2943 = vmatprep.subr.bf16.mxu1 %v3301_v18  ;;  %2958 = vmatprep.subr.bf16.mxu0 %v3301_v18  ;;  %v3520_v29 = vpack.c.bf16 %v731_v28, %v730_v27  ;;  %v3530_v32 = vpack.c.bf16 %v733_v31, %v732_v30  ;;  %v2524_v33 = vld [vmem:[%s3874_s4] ss:$0 sm:$0xff]  ;;  %v2532_v61 = vld [vmem:[%s3443_s25 + $0x18] sm:$0x1]  ;;  %v2531_v63 = vld [vmem:[%s3443_s25 + $0x10] sm:$0x1]  ;;  %p3189_p1 = scmp.ne.s32.totalorder %s2395_s22, %s3188_s23  ;;  %p3195_p6 = scmp.lt.s32.totalorder %s2395_s22, %s2395_s22 }
  0x3e   : > { %2960 = vmatpush3.bf16.msra.mxu0 %v3466_v14  ;;  %2738 = vmatprep.mubr.msk.f32.mxu0 %vm3300_vm3, %v3299_v8  ;;  %v2527_v35 = vld [vmem:[%s3443_s25 + $0x8] sm:$0xff]  ;;  %v820_v62 = vrot.slane %v2532_v61, 7  ;;  %v828_v11 = vunpack.c.0.s8 %v827_v9  ;;  %v2541_v61 = vld [vmem:[%s3443_s25 + $0x12] sm:$0x1]  ;;  %p3196_p7 = scmp.lt.s32.totalorder %s3188_s23, %s3188_s23 }
  0x3f   : > { %2961 = vmatprep.subr.bf16.mxu0 %v3301_v18  ;;  %v3568_v0 = vld [vmem:[%s3876_s6] ss:$0 sm:$0xff]  ;;  %p3190_p2 = pnand %p3189_p1, %p3392_p3 }
  0x40   : > { %2945 = vmatpush3.bf16.msra.mxu1 %v3478_v19  ;;  %v821_v2 = vsel %vm640_vm5, %v820_v62, %v2531_v63  ;;  %v3580_v13 = vsub.s32 %v828_v11, %v830_v12  ;;  %p3197_p8 = por %p3196_p7, %p3195_p6 }
  0x41   : > { %2946 = vmatprep.subr.bf16.mxu1 %v3301_v18  ;;  %p3191_p4 = pneg %p3190_p2 }
  0x42   : > { %2963 = vmatpush3.bf16.msra.mxu0 %v3478_v19 }
  0x43   : > { %2709 = vmatmul.mubr.msk.f32.vlgmr.msra.gmra.mrb[2].mxu1 %vm535_vm4, %v628_v20  ;;  %2964 = vmatprep.subr.bf16.mxu0 %v3301_v18  ;;  %p3198_p11 = pnand %p3197_p8, %p3191_p4 }
  0x44   : > { %2727 = vmatprep.mubr.msk.f32.mxu1 %vm3300_vm3, %v3299_v8  ;;  %2948 = vmatpush3.bf16.msra.mxu1 %v3503_v24 }
  0x45   : > { %2949 = vmatprep.subr.bf16.mxu1 %v3301_v18 }
  0x48   : > { %2951 = vmatpush3.bf16.msra.mxu1 %v3509_v26 }
  0x49   : > { %2952 = vmatprep.subr.bf16.mxu1 %v3301_v18 }
  0x4c   : > { %2954 = vmatpush3.bf16.msra.mxu1 %v3520_v29 }
  0x4d   : > { %2955 = vmatprep.subr.bf16.mxu1 %v3301_v18 }
  0x50   : > { %2957 = vmatpush3.bf16.msra.mxu1 %v3530_v32 }
  0x51   : > { %2976 = vmatprep.subr.bf16.mxu1 %v3301_v18 }
  0xae   : > { %v721_v51 = vpop.permute.xlu0 %720 }
 0x10d   : > { %v619_v34 = vpop.f32.mrb[0].mxu1  ;;  %v529_v36 = vpop.f32.mrb[0].mxu0 }
 0x10e   : > { %v620_v38 = vadd.f32 %v2524_v33, %v619_v34  ;;  %v530_v39 = vadd.f32 %v2524_v33, %v529_v36  ;;  %v2699_v40 = vpop.f32.mrb[1].mxu1  ;;  %v2694_v41 = vpop.f32.mrb[1].mxu0  ;;  %v2537_v36 = vld [vmem:[%s3443_s25 + $0x19] sm:$0x1] }
 0x110   : > { %v625_v42 = vadd.f32 %v2527_v35, %v620_v38  ;;  %v534_v43 = vadd.f32 %v533_v37, %v530_v39  ;;  %v1036_v37 = vrot.slane %v2537_v36, 7  ;;  %v2536_v38 = vld [vmem:[%s3443_s25 + $0x11] sm:$0x1] }
 0x112   : > { %627 = vst.msk [vmem:[#allocation3 + $0x8] sm:$0xff] %vm535_vm4, %v625_v42  ;;  %536 = vst.msk [vmem:[#allocation3] sm:$0xff] %vm535_vm4, %v534_v43  ;;  %v1037_v40 = vsel %vm640_vm5, %v1036_v37, %v2536_v38 }
 0x116   : > { %v712_v44 = vpop.f32.mrb[2].mxu1 }
 0x117   : > { %v2710_v45 = vpop.f32.mrb[3].mxu1 }
 0x119   : > { %v635_v46 = vld [vmem:[#allocation3] sm:$0x1]  ;;  %v636_v47 = vld [vmem:[#allocation3 + $0x8] sm:$0x1]  ;;  %v858_v54 = vld [vmem:[#allocation3 + $0x9] sm:$0x1] }
 0x11a   : > { %v639_v48 = vrot.slane %v636_v47, 7  ;;  %v861_v55 = vrot.slane %v858_v54, 7  ;;  %v857_v56 = vld [vmem:[#allocation3 + $0x1] sm:$0x1]  ;;  %v1073_v25 = vld [vmem:[#allocation3 + $0xa] sm:$0x1] }
 0x11b   : > { %v1076_v27 = vrot.slane %v1073_v25, 7  ;;  %v1072_v28 = vld [vmem:[#allocation3 + $0x2] sm:$0x1]  ;;  %v1503_v12 = vld [vmem:[#allocation3 + $0xc] sm:$0x1] }
 0x11c   : > { %v641_v49 = vsel %vm640_vm5, %v639_v48, %v635_v46  ;;  %v862_v57 = vsel %vm640_vm5, %v861_v55, %v857_v56  ;;  %v2547_v25 = vld [vmem:[%s3443_s25 + $0x1b] sm:$0x1] }
 0x11d   : > { %v713_v50 = vadd.f32 %v712_v44, %v641_v49  ;;  %v1077_v30 = vsel %vm640_vm5, %v1076_v27, %v1072_v28  ;;  %v1466_v27 = vrot.slane %v2547_v25, 7  ;;  %v2546_v28 = vld [vmem:[%s3443_s25 + $0x13] sm:$0x1] }
 0x11f   : > { %3156 = vtanh.f32 %v713_v50 }
 0x129   : > { %v3157_v52 = vpop.eup %3156 }
 0x12a   : > { %718 = vst.msk [vmem:[#allocation4] sm:$0x3] %vm717_vm6, %v3157_v52  ;;  %2739 = vmatmul.mubr.msk.f32.vlgmr.msra.gmra.mrb[2].mxu0 %vm535_vm4, %v3157_v52 }
 0x12b   : > { %724 = vst.msk [vmem:[#allocation4] sm:$0x3] %vm723_vm7, %v721_v51  ;;  %2966 = vmatpush3.bf16.msra.mxu0 %v3503_v24  ;;  %2757 = vmatprep.mubr.msk.f32.mxu0 %vm3300_vm3, %v3299_v8  ;;  %v1288_v51 = vld [vmem:[#allocation3 + $0xb] sm:$0x1] }
 0x12c   : > { %2967 = vmatprep.subr.bf16.mxu0 %v3301_v18  ;;  %v1291_v52 = vrot.slane %v1288_v51, 7  ;;  %v2552_v51 = vld [vmem:[%s3443_s25 + $0x1c] sm:$0x1] }
 0x12f   : > { %2969 = vmatpush3.bf16.msra.mxu0 %v3509_v26 }
 0x130   : > { %2970 = vmatprep.subr.bf16.mxu0 %v3301_v18 }
 0x132   : > { %v725_v53 = vld [vmem:[#allocation4] sm:$0x3] }
 0x133   : > { %2728 = vmatmul.mubr.msk.f32.vlgmr.msra.gmra.mrb[4].mxu1 %vm741_vm8, %v725_v53  ;;  %2972 = vmatpush3.bf16.msra.mxu0 %v3520_v29  ;;  %v1287_v53 = vld [vmem:[#allocation3 + $0x3] sm:$0x1] }
 0x134   : > { %2978 = vmatpush3.bf16.msra.mxu1 %v3466_v14  ;;  %2768 = vmatprep.mubr.msk.f32.mxu1 %vm3300_vm3, %v3299_v8  ;;  %v1292_v54 = vsel %vm640_vm5, %v1291_v52, %v1287_v53  ;;  %v1681_v52 = vrot.slane %v2552_v51, 7  ;;  %v2551_v53 = vld [vmem:[%s3443_s25 + $0x14] sm:$0x1] }
 0x135   : > { %2979 = vmatprep.subr.bf16.mxu1 %v3301_v18  ;;  %2973 = vmatprep.subr.bf16.mxu0 %v3301_v18 }
 0x137   : > { %2975 = vmatpush3.bf16.msra.mxu0 %v3530_v32 }
 0x138   : > { %2981 = vmatpush3.bf16.msra.mxu1 %v3478_v19  ;;  %2994 = vmatprep.subr.bf16.mxu0 %v3301_v18 }
 0x139   : > { %2982 = vmatprep.subr.bf16.mxu1 %v3301_v18 }
 0x1fd   : > { %v933_v58 = vpop.f32.mrb[2].mxu0 }
 0x1fe   : > { %v934_v59 = vadd.f32 %v933_v58, %v862_v57  ;;  %v2740_v60 = vpop.f32.mrb[3].mxu0 }
 0x200   : > { %3158 = vtanh.f32 %v934_v59  ;;  %v2542_v59 = vld [vmem:[%s3443_s25 + $0x1a] sm:$0x1] }
 0x201   : > { %v1251_v60 = vrot.slane %v2542_v59, 7 }
 0x203   : > { %v1252_v63 = vsel %vm640_vm5, %v1251_v60, %v2541_v61 }
 0x206   : > { %v811_v1 = vpop.f32.mrb[4].mxu1 }
 0x207   : > { %v812_v3 = vadd.f32 %v3568_v0, %v811_v1  ;;  %v2729_v4 = vpop.f32.mrb[5].mxu1 }
 0x209   : > { %v823_v5 = vadd.f32 %v821_v2, %v812_v3 }
 0x20a   : > { %v3159_v6 = vpop.eup %3158 }
 0x20b   : > { %938 = vst.msk [vmem:[#allocation4] sm:$0x3] %vm717_vm6, %v3159_v6  ;;  %3160 = vtanh.f32 %v823_v5  ;;  %2769 = vmatmul.mubr.msk.f32.vlgmr.msra.gmra.mrb[6].mxu1 %vm535_vm4, %v3159_v6 }
 0x20c   : > { %2984 = vmatpush3.bf16.msra.mxu1 %v3503_v24  ;;  %2787 = vmatprep.mubr.msk.f32.mxu1 %vm3300_vm3, %v3299_v8 }
 0x20d   : > { %2985 = vmatprep.subr.bf16.mxu1 %v3301_v18 }
 0x210   : > { %2987 = vmatpush3.bf16.msra.mxu1 %v3509_v26 }
 0x211   : > { %2988 = vmatprep.subr.bf16.mxu1 %v3301_v18 }
 0x214   : > { %2990 = vmatpush3.bf16.msra.mxu1 %v3520_v29 }
 0x215   : > { %v3161_v15 = vpop.eup %3160  ;;  %2991 = vmatprep.subr.bf16.mxu1 %v3301_v18 }
 0x216   : > { %v832_v16 = vrot.slane %v3161_v15, %v3580_v13  ;;  %939 = vrot.lane.b32.xlu0 %v3161_v15, %s3302_s12  ;;  %v1506_v15 = vrot.slane %v1503_v12, 7  ;;  %v2556_v12 = vld [vmem:[%s3443_s25 + $0x15] sm:$0x1] }
 0x218   : > { %v833_v17 = vcombine.high %v832_v16, %v832_v16  ;;  %v840_v20 = vrot.slane %v832_v16, %v3580_v13  ;;  %2993 = vmatpush3.bf16.msra.mxu1 %v3530_v32  ;;  %v1502_v16 = vld [vmem:[#allocation3 + $0x4] sm:$0x1] }
 0x219   : > { %3012 = vmatprep.subr.bf16.mxu1 %v3301_v18 }
 0x21a   : > { %v847_v21 = vrot.slane %v833_v17, %v3580_v13  ;;  %851 = vst.msk [vmem:[%s3445_s19] sm:$0x1] %vm850_vm9, %v840_v20  ;;  %v1507_v17 = vsel %vm640_vm5, %v1506_v15, %v1502_v16 }
 0x21c   : > { %852 = vst.msk [vmem:[%s3445_s19 + $0x8] sm:$0x1] %vm850_vm9, %v847_v21 }
 0x288   : > { %v940_v22 = vpop.permute.xlu0 %939 }
 0x289   : > { %942 = vst.msk [vmem:[#allocation4] sm:$0x3] %vm723_vm7, %v940_v22 }
 0x290   : > { %v943_v23 = vld [vmem:[#allocation4] sm:$0x3] }
 0x291   : > { %2758 = vmatmul.mubr.msk.f32.vlgmr.msra.gmra.mrb[4].mxu0 %vm741_vm8, %v943_v23 }
 0x292   : > { %2996 = vmatpush3.bf16.msra.mxu0 %v3466_v14  ;;  %2798 = vmatprep.mubr.msk.f32.mxu0 %vm3300_vm3, %v3299_v8 }
 0x293   : > { %2997 = vmatprep.subr.bf16.mxu0 %v3301_v18 }
 0x296   : > { %2999 = vmatpush3.bf16.msra.mxu0 %v3478_v19 }
 0x297   : > { %3000 = vmatprep.subr.bf16.mxu0 %v3301_v18 }
 0x2de   : > { %v1148_v31 = vpop.f32.mrb[6].mxu1 }
 0x2df   : > { %v1149_v33 = vadd.f32 %v1148_v31, %v1077_v30  ;;  %v2770_v34 = vpop.f32.mrb[7].mxu1  ;;  %v1467_v31 = vsel %vm640_vm5, %v1466_v27, %v2546_v28 }
 0x2e1   : > { %3162 = vtanh.f32 %v1149_v33 }
 0x2eb   : > { %v3163_v35 = vpop.eup %3162 }
 0x2ec   : > { %1153 = vst.msk [vmem:[#allocation4] sm:$0x3] %vm717_vm6, %v3163_v35  ;;  %2799 = vmatmul.mubr.msk.f32.vlgmr.msra.gmra.mrb[6].mxu0 %vm535_vm4, %v3163_v35 }
 0x2ed   : > { %3002 = vmatpush3.bf16.msra.mxu0 %v3503_v24  ;;  %2817 = vmatprep.mubr.msk.f32.mxu0 %vm3300_vm3, %v3299_v8 }
 0x2ee   : > { %3003 = vmatprep.subr.bf16.mxu0 %v3301_v18 }
 0x2f1   : > { %3005 = vmatpush3.bf16.msra.mxu0 %v3509_v26 }
 0x2f2   : > { %3006 = vmatprep.subr.bf16.mxu0 %v3301_v18 }
 0x2f5   : > { %3008 = vmatpush3.bf16.msra.mxu0 %v3520_v29 }
 0x2f6   : > { %3009 = vmatprep.subr.bf16.mxu0 %v3301_v18 }
 0x2f9   : > { %3011 = vmatpush3.bf16.msra.mxu0 %v3530_v32 }
 0x2fa   : > { %3030 = vmatprep.subr.bf16.mxu0 %v3301_v18 }
 0x364   : > { %v1028_v39 = vpop.f32.mrb[4].mxu0 }
 0x365   : > { %v1029_v41 = vadd.f32 %v3568_v0, %v1028_v39  ;;  %v2759_v42 = vpop.f32.mrb[5].mxu0 }
 0x367   : > { %v1039_v43 = vadd.f32 %v1037_v40, %v1029_v41 }
 0x369   : > { %3164 = vtanh.f32 %v1039_v43  ;;  %v1718_v43 = vld [vmem:[#allocation3 + $0xd] sm:$0x1] }
 0x373   : > { %v3165_v44 = vpop.eup %3164 }
 0x374   : > { %v1048_v45 = vrot.slane %v3165_v44, %v3580_v13  ;;  %1154 = vrot.lane.b32.xlu1 %v3165_v44, %s3302_s12  ;;  %v1721_v44 = vrot.slane %v1718_v43, 7 }
 0x376   : > { %v1049_v46 = vcombine.high %v1048_v45, %v1048_v45  ;;  %v1056_v47 = vrot.slane %v1048_v45, %v3580_v13  ;;  %v1717_v45 = vld [vmem:[#allocation3 + $0x5] sm:$0x1] }
 0x378   : > { %v1063_v48 = vrot.slane %v1049_v46, %v3580_v13  ;;  %1066 = vst.msk [vmem:[%s3445_s19 + $0x1] sm:$0x1] %vm850_vm9, %v1056_v47  ;;  %v1722_v46 = vsel %vm640_vm5, %v1721_v44, %v1717_v45 }
 0x37a   : > { %1067 = vst.msk [vmem:[%s3445_s19 + $0x9] sm:$0x1] %vm850_vm9, %v1063_v48 }
 0x3bf   : > { %v1363_v49 = vpop.f32.mrb[6].mxu0 }
 0x3c0   : > { %v2800_v50 = vpop.f32.mrb[7].mxu0  ;;  %v1364_v55 = vadd.f32 %v1363_v49, %v1292_v54 }
 0x3c2   : > { %3166 = vtanh.f32 %v1364_v55  ;;  %v1682_v55 = vsel %vm640_vm5, %v1681_v52, %v2551_v53  ;;  %v2566_v52 = vld [vmem:[%s3443_s25 + $0x17] sm:$0x1] }
 0x3cc   : > { %v3167_v57 = vpop.eup %3166 }
 0x3e6   : > { %v1155_v56 = vpop.permute.xlu1 %1154 }
 0x3e7   : > { %1157 = vst.msk [vmem:[#allocation4] sm:$0x3] %vm723_vm7, %v1155_v56 }
 0x3ee   : > { %v1158_v58 = vld [vmem:[#allocation4] sm:$0x3] }
 0x3ef   : > { %1368 = vst.msk [vmem:[#allocation4] sm:$0x3] %vm717_vm6, %v3167_v57  ;;  %2788 = vmatmul.mubr.msk.f32.vlgmr.msra.gmra.mrb[8].mxu1 %vm741_vm8, %v1158_v58 }
 0x3f0   : > { %3014 = vmatpush3.bf16.msra.mxu1 %v3466_v14  ;;  %2828 = vmatprep.mubr.msk.f32.mxu1 %vm3300_vm3, %v3299_v8 }
 0x3f1   : > { %3015 = vmatprep.subr.bf16.mxu1 %v3301_v18 }
 0x3f4   : > { %3017 = vmatpush3.bf16.msra.mxu1 %v3478_v19 }
 0x3f5   : > { %3018 = vmatprep.subr.bf16.mxu1 %v3301_v18 }
 0x3f7   : > { %2829 = vmatmul.mubr.msk.f32.vlgmr.msra.gmra.mrb[10].mxu1 %vm535_vm4, %v3167_v57 }
 0x3f8   : > { %3020 = vmatpush3.bf16.msra.mxu1 %v3503_v24  ;;  %2847 = vmatprep.mubr.msk.f32.mxu1 %vm3300_vm3, %v3299_v8 }
 0x3f9   : > { %3021 = vmatprep.subr.bf16.mxu1 %v3301_v18 }
 0x3fc   : > { %3023 = vmatpush3.bf16.msra.mxu1 %v3509_v26 }
 0x3fd   : > { %3024 = vmatprep.subr.bf16.mxu1 %v3301_v18 }
 0x400   : > { %3026 = vmatpush3.bf16.msra.mxu1 %v3520_v29 }
 0x401   : > { %3027 = vmatprep.subr.bf16.mxu1 %v3301_v18 }
 0x404   : > { %3029 = vmatpush3.bf16.msra.mxu1 %v3530_v32 }
 0x405   : > { %3048 = vmatprep.subr.bf16.mxu1 %v3301_v18 }
 0x4c2   : > { %v1243_v62 = vpop.f32.mrb[8].mxu1 }
 0x4c3   : > { %v1244_v1 = vadd.f32 %v3568_v0, %v1243_v62  ;;  %v2789_v2 = vpop.f32.mrb[9].mxu1 }
 0x4c5   : > { %v1254_v3 = vadd.f32 %v1252_v63, %v1244_v1 }
 0x4c7   : > { %3168 = vtanh.f32 %v1254_v3  ;;  %v1933_v3 = vld [vmem:[#allocation3 + $0xe] sm:$0x1] }
 0x4ca   : > { %v1578_v4 = vpop.f32.mrb[10].mxu1 }
 0x4cb   : > { %v2830_v5 = vpop.f32.mrb[11].mxu1  ;;  %v1579_v20 = vadd.f32 %v1578_v4, %v1507_v17  ;;  %v1936_v4 = vrot.slane %v1933_v3, 7  ;;  %v2148_v17 = vld [vmem:[#allocation3 + $0xf] sm:$0x1] }
 0x4cc   : > { %v1932_v5 = vld [vmem:[#allocation3 + $0x6] sm:$0x1] }
 0x4cd   : > { %3170 = vtanh.f32 %v1579_v20  ;;  %v2151_v20 = vrot.slane %v2148_v17, 7 }
 0x4d1   : > { %v3169_v6 = vpop.eup %3168 }
 0x4d2   : > { %v1263_v7 = vrot.slane %v3169_v6, %v3580_v13  ;;  %1369 = vrot.lane.b32.xlu1 %v3169_v6, %s3302_s12  ;;  %v1937_v6 = vsel %vm640_vm5, %v1936_v4, %v1932_v5 }
 0x4d4   : > { %v1264_v9 = vcombine.high %v1263_v7, %v1263_v7  ;;  %v1271_v10 = vrot.slane %v1263_v7, %v3580_v13 }
 0x4d6   : > { %v1278_v11 = vrot.slane %v1264_v9, %v3580_v13  ;;  %1281 = vst.msk [vmem:[%s3445_s19 + $0x2] sm:$0x1] %vm850_vm9, %v1271_v10 }
 0x4d7   : > { %v3171_v22 = vpop.eup %3170 }
 0x4d8   : > { %1282 = vst.msk [vmem:[%s3445_s19 + $0xa] sm:$0x1] %vm850_vm9, %v1278_v11 }
 0x544   : > { %v1370_v21 = vpop.permute.xlu1 %1369 }
 0x545   : > { %1372 = vst.msk [vmem:[#allocation4] sm:$0x3] %vm723_vm7, %v1370_v21 }
 0x54c   : > { %v1373_v23 = vld [vmem:[#allocation4] sm:$0x3] }
 0x54d   : > { %2818 = vmatmul.mubr.msk.f32.vlgmr.msra.gmra.mrb[8].mxu0 %vm741_vm8, %v1373_v23  ;;  %1583 = vst.msk [vmem:[#allocation4] sm:$0x3] %vm717_vm6, %v3171_v22 }
 0x54e   : > { %3032 = vmatpush3.bf16.msra.mxu0 %v3466_v14  ;;  %2858 = vmatprep.mubr.msk.f32.mxu0 %vm3300_vm3, %v3299_v8 }
 0x54f   : > { %3033 = vmatprep.subr.bf16.mxu0 %v3301_v18 }
 0x552   : > { %3035 = vmatpush3.bf16.msra.mxu0 %v3478_v19 }
 0x553   : > { %3036 = vmatprep.subr.bf16.mxu0 %v3301_v18 }
 0x555   : > { %2859 = vmatmul.mubr.msk.f32.vlgmr.msra.gmra.mrb[10].mxu0 %vm535_vm4, %v3171_v22 }
 0x556   : > { %3038 = vmatpush3.bf16.msra.mxu0 %v3503_v24  ;;  %2877 = vmatprep.mubr.msk.f32.mxu0 %vm3300_vm3, %v3299_v8 }
 0x557   : > { %3039 = vmatprep.subr.bf16.mxu0 %v3301_v18 }
 0x55a   : > { %3041 = vmatpush3.bf16.msra.mxu0 %v3509_v26 }
 0x55b   : > { %3042 = vmatprep.subr.bf16.mxu0 %v3301_v18 }
 0x55e   : > { %3044 = vmatpush3.bf16.msra.mxu0 %v3520_v29 }
 0x55f   : > { %3045 = vmatprep.subr.bf16.mxu0 %v3301_v18 }
 0x562   : > { %3047 = vmatpush3.bf16.msra.mxu0 %v3530_v32 }
 0x563   : > { %3066 = vmatprep.subr.bf16.mxu0 %v3301_v18 }
 0x620   : > { %v1458_v30 = vpop.f32.mrb[8].mxu0 }
 0x621   : > { %v1459_v33 = vadd.f32 %v3568_v0, %v1458_v30  ;;  %v2819_v34 = vpop.f32.mrb[9].mxu0 }
 0x623   : > { %v1469_v35 = vadd.f32 %v1467_v31, %v1459_v33 }
 0x625   : > { %3172 = vtanh.f32 %v1469_v35  ;;  %v2562_v35 = vld [vmem:[%s3443_s25 + $0x1e] sm:$0x1] }
 0x628   : > { %v1793_v36 = vpop.f32.mrb[10].mxu0 }
 0x629   : > { %v2860_v37 = vpop.f32.mrb[11].mxu0  ;;  %v1794_v47 = vadd.f32 %v1793_v36, %v1722_v46  ;;  %v2111_v36 = vrot.slane %v2562_v35, 7 }
 0x62a   : > { %v2561_v37 = vld [vmem:[%s3443_s25 + $0x16] sm:$0x1] }
 0x62b   : > { %3174 = vtanh.f32 %v1794_v47 }
 0x62f   : > { %v3173_v38 = vpop.eup %3172 }
 0x630   : > { %v1478_v39 = vrot.slane %v3173_v38, %v3580_v13  ;;  %1584 = vrot.lane.b32.xlu0 %v3173_v38, %s3302_s12 }
 0x632   : > { %v1479_v40 = vcombine.high %v1478_v39, %v1478_v39  ;;  %v1486_v41 = vrot.slane %v1478_v39, %v3580_v13  ;;  %v2112_v39 = vsel %vm640_vm5, %v2111_v36, %v2561_v37 }
 0x634   : > { %v1493_v42 = vrot.slane %v1479_v40, %v3580_v13  ;;  %1496 = vst.msk [vmem:[%s3445_s19 + $0x3] sm:$0x1] %vm850_vm9, %v1486_v41 }
 0x635   : > { %v3175_v49 = vpop.eup %3174 }
 0x636   : > { %1497 = vst.msk [vmem:[%s3445_s19 + $0xb] sm:$0x1] %vm850_vm9, %v1493_v42 }
 0x6a2   : > { %v1585_v48 = vpop.permute.xlu0 %1584 }
 0x6a3   : > { %1587 = vst.msk [vmem:[#allocation4] sm:$0x3] %vm723_vm7, %v1585_v48 }
 0x6aa   : > { %v1588_v50 = vld [vmem:[#allocation4] sm:$0x3] }
 0x6ab   : > { %2848 = vmatmul.mubr.msk.f32.vlgmr.msra.gmra.mrb[12].mxu1 %vm741_vm8, %v1588_v50  ;;  %1798 = vst.msk [vmem:[#allocation4] sm:$0x3] %vm717_vm6, %v3175_v49  ;;  %v2567_v50 = vld [vmem:[%s3443_s25 + $0x1f] sm:$0x1] }
 0x6ac   : > { %3050 = vmatpush3.bf16.msra.mxu1 %v3466_v14  ;;  %2888 = vmatprep.mubr.msk.f32.mxu1 %vm3300_vm3, %v3299_v8  ;;  %v2326_v51 = vrot.slane %v2567_v50, 7 }
 0x6ad   : > { %3051 = vmatprep.subr.bf16.mxu1 %v3301_v18 }
 0x6b0   : > { %3053 = vmatpush3.bf16.msra.mxu1 %v3478_v19 }
 0x6b1   : > { %3054 = vmatprep.subr.bf16.mxu1 %v3301_v18 }
 0x6b3   : > { %2889 = vmatmul.mubr.msk.f32.vlgmr.msra.gmra.mrb[14].mxu1 %vm535_vm4, %v3175_v49 }
 0x6b4   : > { %3056 = vmatpush3.bf16.msra.mxu1 %v3503_v24  ;;  %2907 = vmatprep.mubr.msk.f32.mxu1 %vm3300_vm3, %v3299_v8 }
 0x6b5   : > { %3057 = vmatprep.subr.bf16.mxu1 %v3301_v18 }
 0x6b8   : > { %3059 = vmatpush3.bf16.msra.mxu1 %v3509_v26 }
 0x6b9   : > { %3060 = vmatprep.subr.bf16.mxu1 %v3301_v18 }
 0x6bc   : > { %3062 = vmatpush3.bf16.msra.mxu1 %v3520_v29 }
 0x6bd   : > { %3063 = vmatprep.subr.bf16.mxu1 %v3301_v18 }
 0x6c0   : > { %3065 = vmatpush3.bf16.msra.mxu1 %v3530_v32 }
 0x77e   : > { %v1673_v54 = vpop.f32.mrb[12].mxu1 }
 0x77f   : > { %v1674_v56 = vadd.f32 %v3568_v0, %v1673_v54  ;;  %v2849_v57 = vpop.f32.mrb[13].mxu1  ;;  %v2327_v54 = vsel %vm640_vm5, %v2326_v51, %v2566_v52 }
 0x781   : > { %v1684_v58 = vadd.f32 %v1682_v55, %v1674_v56 }
 0x783   : > { %3176 = vtanh.f32 %v1684_v58 }
 0x786   : > { %v2008_v59 = vpop.f32.mrb[14].mxu1 }
 0x787   : > { %v2890_v60 = vpop.f32.mrb[15].mxu1  ;;  %v2009_v7 = vadd.f32 %v2008_v59, %v1937_v6 }
 0x789   : > { %3178 = vtanh.f32 %v2009_v7 }
 0x78d   : > { %v3177_v61 = vpop.eup %3176 }
 0x78e   : > { %v1693_v62 = vrot.slane %v3177_v61, %v3580_v13  ;;  %1799 = vrot.lane.b32.xlu1 %v3177_v61, %s3302_s12 }
 0x790   : > { %v1694_v63 = vcombine.high %v1693_v62, %v1693_v62  ;;  %v1701_v1 = vrot.slane %v1693_v62, %v3580_v13 }
 0x792   : > { %v1708_v2 = vrot.slane %v1694_v63, %v3580_v13  ;;  %1711 = vst.msk [vmem:[%s3445_s19 + $0x4] sm:$0x1] %vm850_vm9, %v1701_v1 }
 0x793   : > { %v3179_v10 = vpop.eup %3178 }
 0x794   : > { %1712 = vst.msk [vmem:[%s3445_s19 + $0xc] sm:$0x1] %vm850_vm9, %v1708_v2 }
 0x800   : > { %v1800_v9 = vpop.permute.xlu1 %1799 }
 0x801   : > { %1802 = vst.msk [vmem:[#allocation4] sm:$0x3] %vm723_vm7, %v1800_v9 }
 0x808   : > { %v1803_v11 = vld [vmem:[#allocation4] sm:$0x3] }
 0x809   : > { %2878 = vmatmul.mubr.msk.f32.vlgmr.msra.gmra.mrb[12].mxu0 %vm741_vm8, %v1803_v11  ;;  %2013 = vst.msk [vmem:[#allocation4] sm:$0x3] %vm717_vm6, %v3179_v10 }
 0x80a   : > { %3068 = vmatpush3.bf16.msra.mxu0 %v3466_v14  ;;  %2918 = vmatprep.mubr.msk.f32.mxu0 %vm3300_vm3, %v3299_v8  ;;  %v2557_v14 = vld [vmem:[%s3443_s25 + $0x1d] sm:$0x1]  ;;  %s2379_s25 = sshll.u32 %s3445_s19, 4  ;;  %s3812_s25 = int_to_ptr.vmem [resolvable:$true] %s2379_s25 }
 0x80b   : > { %3069 = vmatprep.subr.bf16.mxu0 %v3301_v18 }
 0x80e   : > { %3071 = vmatpush3.bf16.msra.mxu0 %v3478_v19  ;;  %v1896_v19 = vrot.slane %v2557_v14, 7 }
 0x80f   : > { %3072 = vmatprep.subr.bf16.mxu0 %v3301_v18 }
 0x811   : > { %2919 = vmatmul.mubr.msk.f32.vlgmr.msra.gmra.mrb[14].mxu0 %vm535_vm4, %v3179_v10 }
 0x812   : > { %3074 = vmatpush3.bf16.msra.mxu0 %v3503_v24  ;;  %2937 = vmatprep.mubr.msk.f32.mxu0 %vm3300_vm3, %v3299_v8  ;;  %v1897_v24 = vsel %vm640_vm5, %v1896_v19, %v2556_v12 }
 0x813   : > { %3075 = vmatprep.subr.bf16.mxu0 %v3301_v18 }
 0x816   : > { %3077 = vmatpush3.bf16.msra.mxu0 %v3509_v26 }
 0x817   : > { %3078 = vmatprep.subr.bf16.mxu0 %v3301_v18 }
 0x81a   : > { %3080 = vmatpush3.bf16.msra.mxu0 %v3520_v29  ;;  %v2147_v29 = vld [vmem:[#allocation3 + $0x7] sm:$0x1] }
 0x81b   : > { %3081 = vmatprep.subr.bf16.mxu0 %v3301_v18  ;;  %v2152_v18 = vsel %vm640_vm5, %v2151_v20, %v2147_v29 }
 0x81e   : > { %3083 = vmatpush3.bf16.msra.mxu0 %v3530_v32 }
 0x8dc   : > { %v1888_v15 = vpop.f32.mrb[12].mxu0 }
 0x8dd   : > { %v1889_v8 = vadd.f32 %v3568_v0, %v1888_v15  ;;  %v2879_v16 = vpop.f32.mrb[13].mxu0 }
 0x8df   : > { %v1899_v26 = vadd.f32 %v1897_v24, %v1889_v8 }
 0x8e1   : > { %3180 = vtanh.f32 %v1899_v26 }
 0x8e4   : > { %v2223_v21 = vpop.f32.mrb[14].mxu0 }
 0x8e5   : > { %v2224_v32 = vadd.f32 %v2223_v21, %v2152_v18  ;;  %v2920_v22 = vpop.f32.mrb[15].mxu0 }
 0x8e7   : > { %3182 = vtanh.f32 %v2224_v32 }
 0x8eb   : > { %v3181_v23 = vpop.eup %3180 }
 0x8ec   : > { %v1908_v25 = vrot.slane %v3181_v23, %v3580_v13  ;;  %2014 = vrot.lane.b32.xlu0 %v3181_v23, %s3302_s12 }
 0x8ee   : > { %v1909_v27 = vcombine.high %v1908_v25, %v1908_v25  ;;  %v1916_v28 = vrot.slane %v1908_v25, %v3580_v13 }
 0x8f0   : > { %v1923_v30 = vrot.slane %v1909_v27, %v3580_v13  ;;  %1926 = vst.msk [vmem:[%s3445_s19 + $0x5] sm:$0x1] %vm850_vm9, %v1916_v28 }
 0x8f1   : > { %v3183_v31 = vpop.eup %3182 }
 0x8f2   : > { %1927 = vst.msk [vmem:[%s3445_s19 + $0xd] sm:$0x1] %vm850_vm9, %v1923_v30 }
 0x8f3   : > { %2358 = vst.msk [vmem:[#allocation2] sm:$0x3] %vm717_vm6, %v3183_v31  ;;  %2359 = vst.msk [vmem:[#allocation9] sm:$0x3] %vm717_vm6, %v3183_v31 }
 0x95e   : > { %v2015_v33 = vpop.permute.xlu0 %2014 }
 0x95f   : > { %2017 = vst.msk [vmem:[#allocation4] sm:$0x3] %vm723_vm7, %v2015_v33 }
 0x966   : > { %v2018_v34 = vld [vmem:[#allocation4] sm:$0x3] }
 0x967   : > { %2908 = vmatmul.mubr.msk.f32.vlgmr.msra.gmra.mrb[16].mxu1 %vm741_vm8, %v2018_v34  ;;  %2228 = vst.msk [vmem:[#allocation4] sm:$0x3] %vm717_vm6, %v3183_v31 }
 0xa3a   : > { %v2103_v38 = vpop.f32.mrb[16].mxu1 }
 0xa3b   : > { %v2104_v40 = vadd.f32 %v3568_v0, %v2103_v38  ;;  %v2909_v41 = vpop.f32.mrb[17].mxu1 }
 0xa3d   : > { %v2114_v42 = vadd.f32 %v2112_v39, %v2104_v40 }
 0xa3f   : > { %3184 = vtanh.f32 %v2114_v42 }
 0xa49   : > { %v3185_v43 = vpop.eup %3184 }
 0xa4a   : > { %v2123_v44 = vrot.slane %v3185_v43, %v3580_v13  ;;  %2229 = vrot.lane.b32.xlu1 %v3185_v43, %s3302_s12 }
 0xa4c   : > { %v2124_v45 = vcombine.high %v2123_v44, %v2123_v44  ;;  %v2131_v46 = vrot.slane %v2123_v44, %v3580_v13 }
 0xa4e   : > { %v2138_v47 = vrot.slane %v2124_v45, %v3580_v13  ;;  %2141 = vst.msk [vmem:[%s3445_s19 + $0x6] sm:$0x1] %vm850_vm9, %v2131_v46 }
 0xa50   : > { %2142 = vst.msk [vmem:[%s3445_s19 + $0xe] sm:$0x1] %vm850_vm9, %v2138_v47 }
 0xabc   : > { %v2230_v48 = vpop.permute.xlu1 %2229 }
 0xabd   : > { %2232 = vst.msk [vmem:[#allocation4] sm:$0x3] %vm723_vm7, %v2230_v48 }
 0xac4   : > { %v2233_v49 = vld [vmem:[#allocation4] sm:$0x3] }
 0xac5   : > { %2938 = vmatmul.mubr.msk.f32.vlgmr.msra.gmra.mrb[16].mxu0 %vm741_vm8, %v2233_v49 }
 0xb98   : > { %v2318_v53 = vpop.f32.mrb[16].mxu0 }
 0xb99   : > { %v2319_v55 = vadd.f32 %v3568_v0, %v2318_v53  ;;  %v2939_v56 = vpop.f32.mrb[17].mxu0 }
 0xb9b   : > { %v2329_v57 = vadd.f32 %v2327_v54, %v2319_v55 }
 0xb9d   : > { %3186 = vtanh.f32 %v2329_v57 }
 0xba7   : > { %v3187_v58 = vpop.eup %3186 }
 0xba8   : > { %v2338_v59 = vrot.slane %v3187_v58, %v3580_v13  ;;  %2360 = vst.msk [vmem:[#allocation2 + $0x2] sm:$0x3] %vm717_vm6, %v3187_v58  ;;  %2362 = vst.msk [vmem:[#allocation9 + $0x2] sm:$0x3] %vm717_vm6, %v3187_v58 }
 0xba9   : > { %3201 = shalt.err (!%p3198_p11)
}
 0xbaa   : > { %s3202_s30 = scalar_lea.hbm %s3878_s8, 64 }
 0xbab   : > { %p3203_p12 = scmp.ne.s32.totalorder %s3878_s8, %s3202_s30  ;;  %p3208_p1 = scmp.lt.u32.totalorder %s3202_s30, %s3878_s8 }
 0xbad   : > { %p3204_p13 = pnand %p3203_p12, %p3392_p3 }
 0xbaf   : > { %p3205_p0 = pneg %p3204_p13 }
 0xbb1   : > { %p3210_p2 = pnand %p3208_p1, %p3205_p0 }
 0xbb3   : > { %3213 = shalt.err (!%p3210_p2)
}
 0xbb4   : > { %s3305_s23 = smov 2   ;;  %v2339_v0 = vcombine.high %v2338_v59, %v2338_v59  ;;  %v2346_v60 = vrot.slane %v2338_v59, %v3580_v13  ;;  %s3810_s14 = scalar_lea.hbm %s3877_s7, %s2569_s16 }
 0xbb5   : > { %3086 = dma.vmem_to_hbm [thread:$0]  (%p3392_p3), %s2395_s22, 64, %s3878_s8, [#allocation10], %s3302_s12, %s3302_s12, %s3305_s23  }
 0xbb6   : > { %v2353_v61 = vrot.slane %v2339_v0, %v3580_v13  ;;  %2356 = vst.msk [vmem:[%s3445_s19 + $0x7] sm:$0x1] %vm850_vm9, %v2346_v60  ;;  %s2364_s12 = scalar_lea.sflag [#allocation8], %s3439_s13  ;;  %s3214_s22 = scalar_lea.vmem %s3812_s25, 256 }
 0xbb7   : > { %p3215_p4 = scmp.ne.s32.totalorder %s3812_s25, %s3214_s22  ;;  %s3306_s18 = smov [#allocation7]  }
 0xbb8   : > { %2357 = vst.msk [vmem:[%s3445_s19 + $0xf] sm:$0x1] %vm850_vm9, %v2353_v61  ;;  %s3218_s16 = sshll.u32 %s3306_s18, 4  ;;  %s3219_s16 = int_to_ptr.vmem [resolvable:$false] %s3218_s16 }
 0xbb9   : > { %p3216_p6 = pnand %p3215_p4, %p3404_p5  ;;  %s3220_s21 = scalar_lea.vmem %s3219_s16, 512 }
 0xbba   : > { %p3221_p8 = scmp.lt.s32.totalorder %s3812_s25, %s3219_s16  ;;  %p3222_p11 = scmp.lt.s32.totalorder %s3220_s21, %s3214_s22 }
 0xbbb   : > { %p3217_p7 = pneg %p3216_p6 }
 0xbbc   : > { %p3223_p12 = por %p3222_p11, %p3221_p8 }
 0xbbe   : > { %p3224_p13 = pnand %p3223_p12, %p3217_p7 }
 0xbc0   : > { %3227 = shalt.err (!%p3224_p13)
}
 0xbc1   : > { %s3228_s19 = scalar_lea.hbm %s3810_s14, 256  ;;  %s3232_s26 = scalar_lea.hbm %s3877_s7, 512 }
 0xbc2   : > { %p3229_p0 = scmp.ne.s32.totalorder %s3810_s14, %s3228_s19  ;;  %p3233_p4 = scmp.lt.u32.totalorder %s3810_s14, %s3877_s7 }
 0xbc3   : > { %p3234_p6 = scmp.lt.u32.totalorder %s3232_s26, %s3228_s19  ;;  %p3236_p8 = scmp.lt.u32.totalorder %s3228_s19, %s3810_s14 }
 0xbc4   : > { %p3230_p1 = pnand %p3229_p0, %p3404_p5 }
 0xbc5   : > { %p3235_p7 = por %p3234_p6, %p3233_p4 }
 0xbc6   : > { %p3231_p2 = pneg %p3230_p1 }
 0xbc7   : > { %p3237_p11 = por %p3236_p8, %p3235_p7 }
 0xbc9   : > { %p3238_p12 = pnand %p3237_p11, %p3231_p2 }
 0xbcb   : > { %3241 = shalt.err (!%p3238_p12)
}
 0xbcc   : > { %s3307_s22 = smov 128   ;;  %s3308_s18 = smov 256  }
 0xbcd   : > { %s3309_s16 = smov 8  }
 0xbce   : > { %3084 = dma.vmem_to_hbm [thread:$0]  (%p3404_p5), %s3812_s25, 256, %s3810_s14, %s2364_s12, %s3307_s22, %s3308_s18, %s3309_s16  }
 0xbcf   : > { %3267 = dma.done.wait (%p3392_p3), [#allocation10], 64  }
 0xbd0   : > { %3269 = vsyncadd (%p3392_p3), [#allocation10], 4294967232 }
 0xbd1 PF: > { %s2413_s21 = sand.u32 1, %s3276_s27   ;;  %p3091_p13 = pnand %p2510_p10, %p3415_p9 }
 0xbd2   : > { %s2414_s19 = scalar_lea.sflag [#allocation8], %s2413_s21 }
 0xbd3   : > { %3271 = dma.done.wait (!%p3091_p13), %s2414_s19, 256  }
 0xbd4   : > { %3273 = vsyncadd (!%p3091_p13), %s2414_s19, 4294967040  ;;  %s23_s10 = sadd.s32 1, %s3296_s10   ;;  %s3886_s17 = sld [smem:[#allocation14_spill]] }
 0xbd5   : > { %p20_p0 = scmp.ge.s32.totalorder %s23_s10, 4   ;;  %s3887_s15 = sld [smem:[#allocation13_spill]] }
 0xbd6   : > { %s3888_s27 = smov %s3280_s28  ;;  %s3889_s28 = smov %s3284_s29 }
 0xbd7   : > { %s3891_s30 = smov %s3292_s9  ;;  %22 = sbr.rel (!%p20_p0) target bundleno = 5 (0x5), region = 191 }
 0xbda   : > { %s3890_s29 = smov %s3886_s17 }
 0xbdb   : > { %s3892_s9 = smov %s3887_s15 }
 0xbde   :  { %2419 = vsyncpa [#allocation8], 1 }
 0xbdf   :  { %2421 = vsyncpa [#allocation8 + $0x1], 1 }
 0xbe0   :  { %2422 = vsyncpa [#allocation10], 1 }

</bundles_post_ra>
